<compile_context>
chip_gen: v6e
topology: v6e:2x2x1
jax: 0.10.0
libtpu: 0.0.40
codegen_flags: <defaults>
</compile_context>

<pallas_src>
import functools

import numpy as np

import jax
import jax.numpy as jnp
from jax.experimental import pallas as pl
from jax.experimental.pallas import tpu as pltpu


_BN_EPS = 1e-5


def _round_up(n, m):
    return ((n + m - 1) // m) * m


def _double_conv_kernel(x_ref, mask_ref, w1_ref, b1_ref, w2_ref, b2_ref,
                        o_ref, p_ref, *, H, W):
    """Fused (conv3x3 -> BN -> ReLU) x 2 for a block of `nb` images.

    x_ref:    (nb, Cin_p, H*W)        activation, channels-major / pixels-minor
    mask_ref: (9, nb*H*W) f32         0/1 border-validity mask per 3x3 tap
    w*_ref:   (Cout_p, 9*Cin_p) bf16  conv weights * BN scale, K = (dy, dx, ci)
    b*_ref:   (Cout_p, 1) f32         folded bias = (b_conv - mean)*scale + beta
    o_ref:    (nb, Cout, H*W)         true (unpadded) output channels
    p_ref:    (9*max(Cin_p,Cout_p), nb*H*W) bf16  shared im2col scratch
    """
    nb, cin_p, hw = x_ref.shape
    cout_p = w1_ref.shape[0]
    cout = o_ref.shape[1]
    width = nb * hw

    # ---- stage 1 im2col: per-image lane rolls into the shared bf16 scratch.
    # Tap (dy, dx) needs x[:, h+dy-1, w+dx-1]; on the flattened pixel axis that
    # is a lane shift of (dy-1)*W + (dx-1) (XLU roll, free slot), with
    # out-of-image positions zeroed by the mask ("same" padding in-kernel).
    for b in range(nb):
        xb = x_ref[b]                                        # (cin_p, hw) f32
        for k in range(9):
            dy, dx = divmod(k, 3)
            off = (dy - 1) * W + (dx - 1)
            tap = xb if off == 0 else pltpu.roll(xb, shift=(-off) % hw, axis=1)
            if k != 4:                                       # center mask == 1
                tap = tap * mask_ref[pl.ds(k, 1), pl.ds(0, hw)]
            p_ref[pl.ds(k * cin_p, cin_p), pl.ds(b * hw, hw)] = (
                tap.astype(p_ref.dtype))

    # One MXU matmul (bf16 operands, f32 accumulation), K = 9*Cin_p.  BN scale
    # is already folded into the weights, so the epilogue is bias + ReLU only.
    y1 = jnp.maximum(
        jnp.dot(w1_ref[...], p_ref[pl.ds(0, 9 * cin_p), :],
                preferred_element_type=jnp.float32) + b1_ref[...], 0.0)

    # ---- stage 2 im2col over the stacked (Cout_p, nb*hw) activation.
    # Rolling the full stacked lane axis only "wraps" across images at border
    # pixels, which the mask zeroes anyway, so a single roll per tap suffices.
    for k in range(9):
        dy, dx = divmod(k, 3)
        off = (dy - 1) * W + (dx - 1)
        tap = y1 if off == 0 else pltpu.roll(y1, shift=(-off) % width, axis=1)
        if k != 4:
            tap = tap * mask_ref[pl.ds(k, 1), :]
        p_ref[pl.ds(k * cout_p, cout_p), :] = tap.astype(p_ref.dtype)

    y2 = jnp.maximum(
        jnp.dot(w2_ref[...], p_ref[pl.ds(0, 9 * cout_p), :],
                preferred_element_type=jnp.float32) + b2_ref[...], 0.0)

    # Lane-dense stores of the true (unpadded) output channels.
    for b in range(nb):
        o_ref[b] = y2[:cout, b * hw:(b + 1) * hw].astype(o_ref.dtype)


def _tap_masks(H, W, nb):
    """(9, nb*H*W) f32 0/1 masks: validity of source pixel (h+dy-1, w+dx-1)."""
    i = np.arange(H * W)
    h, w = i // W, i % W
    rows = []
    for dy in range(3):
        for dx in range(3):
            valid = ((h + dy - 1 >= 0) & (h + dy - 1 < H) &
                     (w + dx - 1 >= 0) & (w + dx - 1 < W))
            rows.append(valid.astype(np.float32))
    m = np.stack(rows)                                  # (9, H*W)
    return jnp.asarray(np.tile(m, (1, nb)))             # (9, nb*H*W)


def _prep_stage(w_oihw, conv_bias, gamma, beta, mean, var, cin_p, cout_p,
                eps=_BN_EPS):
    """PyTorch (Cout, Cin, 3, 3) + BN params -> folded bf16 weights + f32 bias.

    Weights: BN scale folded in, padded, reshaped to (Cout_p, 9*Cin_p) with the
    K axis ordered (dy, dx, ci) to match the im2col patch layout.
    """
    cout, cin = w_oihw.shape[0], w_oihw.shape[1]
    scale = gamma / jnp.sqrt(var + eps)                       # (cout,)
    bias = (conv_bias - mean) * scale + beta                  # (cout,)
    w = jnp.transpose(w_oihw, (0, 2, 3, 1))                   # (Cout, 3, 3, Cin)
    w = w * scale[:, None, None, None]                        # fold BN scale
    w = jnp.pad(w, ((0, cout_p - cout), (0, 0), (0, 0), (0, cin_p - cin)))
    w = w.reshape(cout_p, 9 * cin_p).astype(jnp.bfloat16)
    b = jnp.pad(bias, ((0, cout_p - cout),)).reshape(cout_p, 1)
    return w, b.astype(jnp.float32)


def _pick_nb(B, cin_p, cout_p, hw, budget_bytes=4 << 20):
    """How many images to stack along the matmul N axis per grid step."""
    per_img = 9 * max(cin_p, cout_p) * hw * 2                 # bf16 patch scratch
    per_img += (cin_p + 2 * cout_p) * hw * 4                  # x block / y1 / out
    nb = int(max(1, min(B, budget_bytes // max(per_img, 1))))
    while B % nb:
        nb -= 1
    return nb


@jax.jit
def double_conv_forward(x_nchw, params):
    """Reproduces double_conv.forward: (conv3x3 => BN => ReLU) * 2, NCHW in/out."""
    B, cin, H, W = x_nchw.shape
    cout = params["w1"].shape[0]
    hw = H * W
    # 16-row channel padding: bf16 packs 16 sublane rows per vreg, so every
    # im2col row-block store stays a full unmasked vst.
    cin_p, cout_p = _round_up(cin, 16), _round_up(cout, 16)
    nb = _pick_nb(B, cin_p, cout_p, hw)

    # NCHW -> (B, C, H*W): metadata-only reshape; pixels land on the lane axis.
    # Lane-dense stores assume H*W is a multiple of 128 (true here: 256);
    # other sizes still work but degrade to masked stores.
    x = x_nchw.reshape(B, cin, hw)
    if cin_p != cin:
        x = jnp.pad(x, ((0, 0), (0, cin_p - cin), (0, 0)))

    masks = _tap_masks(H, W, nb)
    w1, b1 = _prep_stage(params["w1"], params["b1"], params["gamma1"],
                         params["beta1"], params["mean1"], params["var1"],
                         cin_p, cout_p)
    w2, b2 = _prep_stage(params["w2"], params["b2"], params["gamma2"],
                         params["beta2"], params["mean2"], params["var2"],
                         cout_p, cout_p)

    out = pl.pallas_call(
        functools.partial(_double_conv_kernel, H=H, W=W),
        out_shape=jax.ShapeDtypeStruct((B, cout, hw), x_nchw.dtype),
        grid_spec=pltpu.PrefetchScalarGridSpec(
            num_scalar_prefetch=0,
            grid=(B // nb,),
            in_specs=[
                pl.BlockSpec((nb, cin_p, hw), lambda i: (i, 0, 0)),       # x
                pl.BlockSpec((9, nb * hw), lambda i: (0, 0)),             # masks
                pl.BlockSpec((cout_p, 9 * cin_p), lambda i: (0, 0)),      # w1
                pl.BlockSpec((cout_p, 1), lambda i: (0, 0)),              # bias1
                pl.BlockSpec((cout_p, 9 * cout_p), lambda i: (0, 0)),     # w2
                pl.BlockSpec((cout_p, 1), lambda i: (0, 0)),              # bias2
            ],
            out_specs=pl.BlockSpec((nb, cout, hw), lambda i: (i, 0, 0)),
            scratch_shapes=[
                # Single bf16 im2col scratch shared by both stages.
                pltpu.VMEM((9 * max(cin_p, cout_p), nb * hw), jnp.bfloat16),
            ],
        ),
        compiler_params=pltpu.CompilerParams(
            dimension_semantics=("parallel",)),
    )(x, masks, w1, b1, w2, b2)

    return out.reshape(B, cout, H, W)


def init_double_conv_params(key, in_ch, out_ch):
    """Deterministic synthetic params matching nn.Conv2d / BatchNorm2d shapes."""
    ks = jax.random.split(key, 8)
    return {
        "w1": 0.1 * jax.random.normal(ks[0], (out_ch, in_ch, 3, 3), jnp.float32),
        "b1": 0.05 * jax.random.normal(ks[1], (out_ch,), jnp.float32),
        "gamma1": 1.0 + 0.1 * jax.random.normal(ks[2], (out_ch,), jnp.float32),
        "beta1": 0.05 * jax.random.normal(ks[3], (out_ch,), jnp.float32),
        "mean1": 0.01 * jax.random.normal(ks[4], (out_ch,), jnp.float32),
        "var1": jnp.abs(1.0 + 0.1 * jax.random.normal(ks[5], (out_ch,), jnp.float32)),
        "w2": 0.1 * jax.random.normal(ks[6], (out_ch, out_ch, 3, 3), jnp.float32),
        "b2": 0.05 * jax.random.normal(ks[7], (out_ch,), jnp.float32),
        "gamma2": jnp.ones((out_ch,), jnp.float32),
        "beta2": jnp.zeros((out_ch,), jnp.float32),
        "mean2": jnp.zeros((out_ch,), jnp.float32),
        "var2": jnp.ones((out_ch,), jnp.float32),
    }


def _reference_double_conv(x_nchw, p):
    """Pure-XLA f32 reference for a loose numerical sanity check."""
    def stage(x, w, b, gamma, beta, mean, var):
        y = jax.lax.conv_general_dilated(
            x, w, window_strides=(1, 1), padding=((1, 1), (1, 1)),
            dimension_numbers=("NCHW", "OIHW", "NCHW"))
        y = y + b[None, :, None, None]
        inv = (gamma / jnp.sqrt(var + _BN_EPS))[None, :, None, None]
        y = (y - mean[None, :, None, None]) * inv + beta[None, :, None, None]
        return jnp.maximum(y, 0.0)

    y = stage(x_nchw, p["w1"], p["b1"], p["gamma1"], p["beta1"],
              p["mean1"], p["var1"])
    return stage(y, p["w2"], p["b2"], p["gamma2"], p["beta2"],
                 p["mean2"], p["var2"])


if __name__ == "__main__":
    key = jax.random.PRNGKey(0)
    k_x, k_p = jax.random.split(key)

    B, C_in, C_out, H, W = 2, 4, 8, 16, 16
    x = jax.random.normal(k_x, (B, C_in, H, W), jnp.float32)
    params = init_double_conv_params(k_p, C_in, C_out)

    out = jax.block_until_ready(double_conv_forward(x, params))
    assert out.shape == (B, C_out, H, W), out.shape
    assert bool(jnp.all(out >= 0.0)), "ReLU output must be non-negative"

    # Loose tolerance: MXU operands (weights incl. folded BN scale, patches)
    # are bf16; accumulation and the bias/ReLU epilogue are f32.
    ref = _reference_double_conv(x, params)
    max_err = float(jnp.max(jnp.abs(out - ref)))
    assert max_err < 1e-1, f"mismatch vs XLA reference: max |err| = {max_err}"

    print("KERNEL_OK")
</pallas_src>

<mosaic_0001>
module attributes {stable_mosaic.version = 11 : i64} {
  func.func @_double_conv_kernel(%arg0: i32, %arg1: memref<2x16x256xf32, #tpu.memory_space<vmem>>, %arg2: memref<9x512xf32, #tpu.memory_space<vmem>>, %arg3: memref<16x144xbf16, #tpu.memory_space<vmem>>, %arg4: memref<16x1xf32, #tpu.memory_space<vmem>>, %arg5: memref<16x144xbf16, #tpu.memory_space<vmem>>, %arg6: memref<16x1xf32, #tpu.memory_space<vmem>>, %arg7: memref<2x8x256xf32, #tpu.memory_space<vmem>>, %arg8: memref<144x512xbf16, #tpu.memory_space<vmem>>) attributes {dimension_semantics = [#tpu.dimension_semantics<parallel>], iteration_bounds = array<i64: 1>, scalar_prefetch = 0 : i64, scratch_operands = 1 : i64, tpu.core_type = #tpu.core_type<tc>, window_params = [{transform_indices = @transform_0, window_bounds = array<i64: 2, 16, 256>}, {pipeline_mode = #tpu.pipeline_mode<synchronous>, transform_indices = @transform_1, window_bounds = array<i64: 9, 512>}, {pipeline_mode = #tpu.pipeline_mode<synchronous>, transform_indices = @transform_2, window_bounds = array<i64: 16, 144>}, {pipeline_mode = #tpu.pipeline_mode<synchronous>, transform_indices = @transform_3, window_bounds = array<i64: 16, 1>}, {pipeline_mode = #tpu.pipeline_mode<synchronous>, transform_indices = @transform_4, window_bounds = array<i64: 16, 144>}, {pipeline_mode = #tpu.pipeline_mode<synchronous>, transform_indices = @transform_5, window_bounds = array<i64: 16, 1>}, {transform_indices = @transform_6, window_bounds = array<i64: 2, 8, 256>}]} {
    %c0 = arith.constant 0 : index
    %c0_0 = arith.constant 0 : index
    %c0_1 = arith.constant 0 : index
    %0 = vector.load %arg1[%c0, %c0_0, %c0_1] : memref<2x16x256xf32, #tpu.memory_space<vmem>>, vector<1x16x256xf32>
    %1 = vector.shape_cast %0 : vector<1x16x256xf32> to vector<16x256xf32>
    %c17_i32 = arith.constant 17 : i32
    %2 = tpu.dynamic_rotate %1 by %c17_i32 dim 1 : vector<16x256xf32>, i32 -> vector<16x256xf32>
    %c0_2 = arith.constant 0 : index
    %c0_3 = arith.constant 0 : index
    %3 = vector.load %arg2[%c0_2, %c0_3] : memref<9x512xf32, #tpu.memory_space<vmem>>, vector<1x256xf32>
    %4 = vector.broadcast %3 : vector<1x256xf32> to vector<16x256xf32>
    %5 = arith.mulf %2, %4 : vector<16x256xf32>
    %6 = arith.truncf %5 : vector<16x256xf32> to vector<16x256xbf16>
    %c0_4 = arith.constant 0 : index
    %c0_5 = arith.constant 0 : index
    %7 = vector.load %arg8[%c0_4, %c0_5] : memref<144x512xbf16, #tpu.memory_space<vmem>>, vector<16x256xbf16>
    tpu.vector_store %arg8[%c0_4, %c0_5], %6 {strides = array<i32>} : memref<144x512xbf16, #tpu.memory_space<vmem>>, vector<16x256xbf16>,
    %c16_i32 = arith.constant 16 : i32
    %8 = tpu.dynamic_rotate %1 by %c16_i32 dim 1 : vector<16x256xf32>, i32 -> vector<16x256xf32>
    %c1 = arith.constant 1 : index
    %c0_6 = arith.constant 0 : index
    %9 = vector.load %arg2[%c1, %c0_6] : memref<9x512xf32, #tpu.memory_space<vmem>>, vector<1x256xf32>
    %10 = vector.broadcast %9 : vector<1x256xf32> to vector<16x256xf32>
    %11 = arith.mulf %8, %10 : vector<16x256xf32>
    %12 = arith.truncf %11 : vector<16x256xf32> to vector<16x256xbf16>
    %c16 = arith.constant 16 : index
    %c0_7 = arith.constant 0 : index
    %13 = vector.load %arg8[%c16, %c0_7] : memref<144x512xbf16, #tpu.memory_space<vmem>>, vector<16x256xbf16>
    tpu.vector_store %arg8[%c16, %c0_7], %12 {strides = array<i32>} : memref<144x512xbf16, #tpu.memory_space<vmem>>, vector<16x256xbf16>,
    %c15_i32 = arith.constant 15 : i32
    %14 = tpu.dynamic_rotate %1 by %c15_i32 dim 1 : vector<16x256xf32>, i32 -> vector<16x256xf32>
    %c2 = arith.constant 2 : index
    %c0_8 = arith.constant 0 : index
    %15 = vector.load %arg2[%c2, %c0_8] : memref<9x512xf32, #tpu.memory_space<vmem>>, vector<1x256xf32>
    %16 = vector.broadcast %15 : vector<1x256xf32> to vector<16x256xf32>
    %17 = arith.mulf %14, %16 : vector<16x256xf32>
    %18 = arith.truncf %17 : vector<16x256xf32> to vector<16x256xbf16>
    %c32 = arith.constant 32 : index
    %c0_9 = arith.constant 0 : index
    %19 = vector.load %arg8[%c32, %c0_9] : memref<144x512xbf16, #tpu.memory_space<vmem>>, vector<16x256xbf16>
    tpu.vector_store %arg8[%c32, %c0_9], %18 {strides = array<i32>} : memref<144x512xbf16, #tpu.memory_space<vmem>>, vector<16x256xbf16>,
    %c1_i32 = arith.constant 1 : i32
    %20 = tpu.dynamic_rotate %1 by %c1_i32 dim 1 : vector<16x256xf32>, i32 -> vector<16x256xf32>
    %c3 = arith.constant 3 : index
    %c0_10 = arith.constant 0 : index
    %21 = vector.load %arg2[%c3, %c0_10] : memref<9x512xf32, #tpu.memory_space<vmem>>, vector<1x256xf32>
    %22 = vector.broadcast %21 : vector<1x256xf32> to vector<16x256xf32>
    %23 = arith.mulf %20, %22 : vector<16x256xf32>
    %24 = arith.truncf %23 : vector<16x256xf32> to vector<16x256xbf16>
    %c48 = arith.constant 48 : index
    %c0_11 = arith.constant 0 : index
    %25 = vector.load %arg8[%c48, %c0_11] : memref<144x512xbf16, #tpu.memory_space<vmem>>, vector<16x256xbf16>
    tpu.vector_store %arg8[%c48, %c0_11], %24 {strides = array<i32>} : memref<144x512xbf16, #tpu.memory_space<vmem>>, vector<16x256xbf16>,
    %26 = arith.truncf %1 : vector<16x256xf32> to vector<16x256xbf16>
    %c64 = arith.constant 64 : index
    %c0_12 = arith.constant 0 : index
    %27 = vector.load %arg8[%c64, %c0_12] : memref<144x512xbf16, #tpu.memory_space<vmem>>, vector<16x256xbf16>
    tpu.vector_store %arg8[%c64, %c0_12], %26 {strides = array<i32>} : memref<144x512xbf16, #tpu.memory_space<vmem>>, vector<16x256xbf16>,
    %c255_i32 = arith.constant 255 : i32
    %28 = tpu.dynamic_rotate %1 by %c255_i32 dim 1 : vector<16x256xf32>, i32 -> vector<16x256xf32>
    %c5 = arith.constant 5 : index
    %c0_13 = arith.constant 0 : index
    %29 = vector.load %arg2[%c5, %c0_13] : memref<9x512xf32, #tpu.memory_space<vmem>>, vector<1x256xf32>
    %30 = vector.broadcast %29 : vector<1x256xf32> to vector<16x256xf32>
    %31 = arith.mulf %28, %30 : vector<16x256xf32>
    %32 = arith.truncf %31 : vector<16x256xf32> to vector<16x256xbf16>
    %c80 = arith.constant 80 : index
    %c0_14 = arith.constant 0 : index
    %33 = vector.load %arg8[%c80, %c0_14] : memref<144x512xbf16, #tpu.memory_space<vmem>>, vector<16x256xbf16>
    tpu.vector_store %arg8[%c80, %c0_14], %32 {strides = array<i32>} : memref<144x512xbf16, #tpu.memory_space<vmem>>, vector<16x256xbf16>,
    %c241_i32 = arith.constant 241 : i32
    %34 = tpu.dynamic_rotate %1 by %c241_i32 dim 1 : vector<16x256xf32>, i32 -> vector<16x256xf32>
    %c6 = arith.constant 6 : index
    %c0_15 = arith.constant 0 : index
    %35 = vector.load %arg2[%c6, %c0_15] : memref<9x512xf32, #tpu.memory_space<vmem>>, vector<1x256xf32>
    %36 = vector.broadcast %35 : vector<1x256xf32> to vector<16x256xf32>
    %37 = arith.mulf %34, %36 : vector<16x256xf32>
    %38 = arith.truncf %37 : vector<16x256xf32> to vector<16x256xbf16>
    %c96 = arith.constant 96 : index
    %c0_16 = arith.constant 0 : index
    %39 = vector.load %arg8[%c96, %c0_16] : memref<144x512xbf16, #tpu.memory_space<vmem>>, vector<16x256xbf16>
    tpu.vector_store %arg8[%c96, %c0_16], %38 {strides = array<i32>} : memref<144x512xbf16, #tpu.memory_space<vmem>>, vector<16x256xbf16>,
    %c240_i32 = arith.constant 240 : i32
    %40 = tpu.dynamic_rotate %1 by %c240_i32 dim 1 : vector<16x256xf32>, i32 -> vector<16x256xf32>
    %c7 = arith.constant 7 : index
    %c0_17 = arith.constant 0 : index
    %41 = vector.load %arg2[%c7, %c0_17] : memref<9x512xf32, #tpu.memory_space<vmem>>, vector<1x256xf32>
    %42 = vector.broadcast %41 : vector<1x256xf32> to vector<16x256xf32>
    %43 = arith.mulf %40, %42 : vector<16x256xf32>
    %44 = arith.truncf %43 : vector<16x256xf32> to vector<16x256xbf16>
    %c112 = arith.constant 112 : index
    %c0_18 = arith.constant 0 : index
    %45 = vector.load %arg8[%c112, %c0_18] : memref<144x512xbf16, #tpu.memory_space<vmem>>, vector<16x256xbf16>
    tpu.vector_store %arg8[%c112, %c0_18], %44 {strides = array<i32>} : memref<144x512xbf16, #tpu.memory_space<vmem>>, vector<16x256xbf16>,
    %c239_i32 = arith.constant 239 : i32
    %46 = tpu.dynamic_rotate %1 by %c239_i32 dim 1 : vector<16x256xf32>, i32 -> vector<16x256xf32>
    %c8 = arith.constant 8 : index
    %c0_19 = arith.constant 0 : index
    %47 = vector.load %arg2[%c8, %c0_19] : memref<9x512xf32, #tpu.memory_space<vmem>>, vector<1x256xf32>
    %48 = vector.broadcast %47 : vector<1x256xf32> to vector<16x256xf32>
    %49 = arith.mulf %46, %48 : vector<16x256xf32>
    %50 = arith.truncf %49 : vector<16x256xf32> to vector<16x256xbf16>
    %c128 = arith.constant 128 : index
    %c0_20 = arith.constant 0 : index
    %51 = vector.load %arg8[%c128, %c0_20] : memref<144x512xbf16, #tpu.memory_space<vmem>>, vector<16x256xbf16>
    tpu.vector_store %arg8[%c128, %c0_20], %50 {strides = array<i32>} : memref<144x512xbf16, #tpu.memory_space<vmem>>, vector<16x256xbf16>,
    %c1_21 = arith.constant 1 : index
    %c0_22 = arith.constant 0 : index
    %c0_23 = arith.constant 0 : index
    %52 = vector.load %arg1[%c1_21, %c0_22, %c0_23] : memref<2x16x256xf32, #tpu.memory_space<vmem>>, vector<1x16x256xf32>
    %53 = vector.shape_cast %52 : vector<1x16x256xf32> to vector<16x256xf32>
    %c17_i32_24 = arith.constant 17 : i32
    %54 = tpu.dynamic_rotate %53 by %c17_i32_24 dim 1 : vector<16x256xf32>, i32 -> vector<16x256xf32>
    %c0_25 = arith.constant 0 : index
    %c0_26 = arith.constant 0 : index
    %55 = vector.load %arg2[%c0_25, %c0_26] : memref<9x512xf32, #tpu.memory_space<vmem>>, vector<1x256xf32>
    %56 = vector.broadcast %55 : vector<1x256xf32> to vector<16x256xf32>
    %57 = arith.mulf %54, %56 : vector<16x256xf32>
    %58 = arith.truncf %57 : vector<16x256xf32> to vector<16x256xbf16>
    %c0_27 = arith.constant 0 : index
    %c256 = arith.constant 256 : index
    %59 = vector.load %arg8[%c0_27, %c256] : memref<144x512xbf16, #tpu.memory_space<vmem>>, vector<16x256xbf16>
    tpu.vector_store %arg8[%c0_27, %c256], %58 {strides = array<i32>} : memref<144x512xbf16, #tpu.memory_space<vmem>>, vector<16x256xbf16>,
    %c16_i32_28 = arith.constant 16 : i32
    %60 = tpu.dynamic_rotate %53 by %c16_i32_28 dim 1 : vector<16x256xf32>, i32 -> vector<16x256xf32>
    %c1_29 = arith.constant 1 : index
    %c0_30 = arith.constant 0 : index
    %61 = vector.load %arg2[%c1_29, %c0_30] : memref<9x512xf32, #tpu.memory_space<vmem>>, vector<1x256xf32>
    %62 = vector.broadcast %61 : vector<1x256xf32> to vector<16x256xf32>
    %63 = arith.mulf %60, %62 : vector<16x256xf32>
    %64 = arith.truncf %63 : vector<16x256xf32> to vector<16x256xbf16>
    %c16_31 = arith.constant 16 : index
    %c256_32 = arith.constant 256 : index
    %65 = vector.load %arg8[%c16_31, %c256_32] : memref<144x512xbf16, #tpu.memory_space<vmem>>, vector<16x256xbf16>
    tpu.vector_store %arg8[%c16_31, %c256_32], %64 {strides = array<i32>} : memref<144x512xbf16, #tpu.memory_space<vmem>>, vector<16x256xbf16>,
    %c15_i32_33 = arith.constant 15 : i32
    %66 = tpu.dynamic_rotate %53 by %c15_i32_33 dim 1 : vector<16x256xf32>, i32 -> vector<16x256xf32>
    %c2_34 = arith.constant 2 : index
    %c0_35 = arith.constant 0 : index
    %67 = vector.load %arg2[%c2_34, %c0_35] : memref<9x512xf32, #tpu.memory_space<vmem>>, vector<1x256xf32>
    %68 = vector.broadcast %67 : vector<1x256xf32> to vector<16x256xf32>
    %69 = arith.mulf %66, %68 : vector<16x256xf32>
    %70 = arith.truncf %69 : vector<16x256xf32> to vector<16x256xbf16>
    %c32_36 = arith.constant 32 : index
    %c256_37 = arith.constant 256 : index
    %71 = vector.load %arg8[%c32_36, %c256_37] : memref<144x512xbf16, #tpu.memory_space<vmem>>, vector<16x256xbf16>
    tpu.vector_store %arg8[%c32_36, %c256_37], %70 {strides = array<i32>} : memref<144x512xbf16, #tpu.memory_space<vmem>>, vector<16x256xbf16>,
    %c1_i32_38 = arith.constant 1 : i32
    %72 = tpu.dynamic_rotate %53 by %c1_i32_38 dim 1 : vector<16x256xf32>, i32 -> vector<16x256xf32>
    %c3_39 = arith.constant 3 : index
    %c0_40 = arith.constant 0 : index
    %73 = vector.load %arg2[%c3_39, %c0_40] : memref<9x512xf32, #tpu.memory_space<vmem>>, vector<1x256xf32>
    %74 = vector.broadcast %73 : vector<1x256xf32> to vector<16x256xf32>
    %75 = arith.mulf %72, %74 : vector<16x256xf32>
    %76 = arith.truncf %75 : vector<16x256xf32> to vector<16x256xbf16>
    %c48_41 = arith.constant 48 : index
    %c256_42 = arith.constant 256 : index
    %77 = vector.load %arg8[%c48_41, %c256_42] : memref<144x512xbf16, #tpu.memory_space<vmem>>, vector<16x256xbf16>
    tpu.vector_store %arg8[%c48_41, %c256_42], %76 {strides = array<i32>} : memref<144x512xbf16, #tpu.memory_space<vmem>>, vector<16x256xbf16>,
    %78 = arith.truncf %53 : vector<16x256xf32> to vector<16x256xbf16>
    %c64_43 = arith.constant 64 : index
    %c256_44 = arith.constant 256 : index
    %79 = vector.load %arg8[%c64_43, %c256_44] : memref<144x512xbf16, #tpu.memory_space<vmem>>, vector<16x256xbf16>
    tpu.vector_store %arg8[%c64_43, %c256_44], %78 {strides = array<i32>} : memref<144x512xbf16, #tpu.memory_space<vmem>>, vector<16x256xbf16>,
    %c255_i32_45 = arith.constant 255 : i32
    %80 = tpu.dynamic_rotate %53 by %c255_i32_45 dim 1 : vector<16x256xf32>, i32 -> vector<16x256xf32>
    %c5_46 = arith.constant 5 : index
    %c0_47 = arith.constant 0 : index
    %81 = vector.load %arg2[%c5_46, %c0_47] : memref<9x512xf32, #tpu.memory_space<vmem>>, vector<1x256xf32>
    %82 = vector.broadcast %81 : vector<1x256xf32> to vector<16x256xf32>
    %83 = arith.mulf %80, %82 : vector<16x256xf32>
    %84 = arith.truncf %83 : vector<16x256xf32> to vector<16x256xbf16>
    %c80_48 = arith.constant 80 : index
    %c256_49 = arith.constant 256 : index
    %85 = vector.load %arg8[%c80_48, %c256_49] : memref<144x512xbf16, #tpu.memory_space<vmem>>, vector<16x256xbf16>
    tpu.vector_store %arg8[%c80_48, %c256_49], %84 {strides = array<i32>} : memref<144x512xbf16, #tpu.memory_space<vmem>>, vector<16x256xbf16>,
    %c241_i32_50 = arith.constant 241 : i32
    %86 = tpu.dynamic_rotate %53 by %c241_i32_50 dim 1 : vector<16x256xf32>, i32 -> vector<16x256xf32>
    %c6_51 = arith.constant 6 : index
    %c0_52 = arith.constant 0 : index
    %87 = vector.load %arg2[%c6_51, %c0_52] : memref<9x512xf32, #tpu.memory_space<vmem>>, vector<1x256xf32>
    %88 = vector.broadcast %87 : vector<1x256xf32> to vector<16x256xf32>
    %89 = arith.mulf %86, %88 : vector<16x256xf32>
    %90 = arith.truncf %89 : vector<16x256xf32> to vector<16x256xbf16>
    %c96_53 = arith.constant 96 : index
    %c256_54 = arith.constant 256 : index
    %91 = vector.load %arg8[%c96_53, %c256_54] : memref<144x512xbf16, #tpu.memory_space<vmem>>, vector<16x256xbf16>
    tpu.vector_store %arg8[%c96_53, %c256_54], %90 {strides = array<i32>} : memref<144x512xbf16, #tpu.memory_space<vmem>>, vector<16x256xbf16>,
    %c240_i32_55 = arith.constant 240 : i32
    %92 = tpu.dynamic_rotate %53 by %c240_i32_55 dim 1 : vector<16x256xf32>, i32 -> vector<16x256xf32>
    %c7_56 = arith.constant 7 : index
    %c0_57 = arith.constant 0 : index
    %93 = vector.load %arg2[%c7_56, %c0_57] : memref<9x512xf32, #tpu.memory_space<vmem>>, vector<1x256xf32>
    %94 = vector.broadcast %93 : vector<1x256xf32> to vector<16x256xf32>
    %95 = arith.mulf %92, %94 : vector<16x256xf32>
    %96 = arith.truncf %95 : vector<16x256xf32> to vector<16x256xbf16>
    %c112_58 = arith.constant 112 : index
    %c256_59 = arith.constant 256 : index
    %97 = vector.load %arg8[%c112_58, %c256_59] : memref<144x512xbf16, #tpu.memory_space<vmem>>, vector<16x256xbf16>
    tpu.vector_store %arg8[%c112_58, %c256_59], %96 {strides = array<i32>} : memref<144x512xbf16, #tpu.memory_space<vmem>>, vector<16x256xbf16>,
    %c239_i32_60 = arith.constant 239 : i32
    %98 = tpu.dynamic_rotate %53 by %c239_i32_60 dim 1 : vector<16x256xf32>, i32 -> vector<16x256xf32>
    %c8_61 = arith.constant 8 : index
    %c0_62 = arith.constant 0 : index
    %99 = vector.load %arg2[%c8_61, %c0_62] : memref<9x512xf32, #tpu.memory_space<vmem>>, vector<1x256xf32>
    %100 = vector.broadcast %99 : vector<1x256xf32> to vector<16x256xf32>
    %101 = arith.mulf %98, %100 : vector<16x256xf32>
    %102 = arith.truncf %101 : vector<16x256xf32> to vector<16x256xbf16>
    %c128_63 = arith.constant 128 : index
    %c256_64 = arith.constant 256 : index
    %103 = vector.load %arg8[%c128_63, %c256_64] : memref<144x512xbf16, #tpu.memory_space<vmem>>, vector<16x256xbf16>
    tpu.vector_store %arg8[%c128_63, %c256_64], %102 {strides = array<i32>} : memref<144x512xbf16, #tpu.memory_space<vmem>>, vector<16x256xbf16>,
    %c0_65 = arith.constant 0 : index
    %c0_66 = arith.constant 0 : index
    %104 = vector.load %arg3[%c0_65, %c0_66] : memref<16x144xbf16, #tpu.memory_space<vmem>>, vector<16x144xbf16>
    %c0_67 = arith.constant 0 : index
    %c0_68 = arith.constant 0 : index
    %105 = vector.load %arg8[%c0_67, %c0_68] : memref<144x512xbf16, #tpu.memory_space<vmem>>, vector<144x512xbf16>
    %cst = arith.constant dense<0.000000e+00> : vector<16x512xf32>
    %106 = tpu.matmul %104, %105, %cst {dimension_numbers = #tpu.dot_dimension_numbers<[1], [0], [0], [1], [0, 0, 1, 1], [], []>} : vector<16x144xbf16>, vector<144x512xbf16>, vector<16x512xf32> -> vector<16x512xf32>
    %c0_69 = arith.constant 0 : index
    %c0_70 = arith.constant 0 : index
    %107 = vector.load %arg4[%c0_69, %c0_70] : memref<16x1xf32, #tpu.memory_space<vmem>>, vector<16x1xf32>
    %108 = vector.broadcast %107 : vector<16x1xf32> to vector<16x512xf32>
    %109 = arith.addf %106, %108 : vector<16x512xf32>
    %cst_71 = arith.constant 0.000000e+00 : f32
    %110 = vector.broadcast %cst_71 : f32 to vector<16x512xf32>
    %111 = arith.maximumf %109, %110 : vector<16x512xf32>
    %c17_i32_72 = arith.constant 17 : i32
    %112 = tpu.dynamic_rotate %111 by %c17_i32_72 dim 1 : vector<16x512xf32>, i32 -> vector<16x512xf32>
    %c0_73 = arith.constant 0 : index
    %c0_74 = arith.constant 0 : index
    %113 = vector.load %arg2[%c0_73, %c0_74] : memref<9x512xf32, #tpu.memory_space<vmem>>, vector<1x512xf32>
    %114 = vector.broadcast %113 : vector<1x512xf32> to vector<16x512xf32>
    %115 = arith.mulf %112, %114 : vector<16x512xf32>
    %116 = arith.truncf %115 : vector<16x512xf32> to vector<16x512xbf16>
    %c0_75 = arith.constant 0 : index
    %c0_76 = arith.constant 0 : index
    %117 = vector.load %arg8[%c0_75, %c0_76] : memref<144x512xbf16, #tpu.memory_space<vmem>>, vector<16x512xbf16>
    tpu.vector_store %arg8[%c0_75, %c0_76], %116 {strides = array<i32>} : memref<144x512xbf16, #tpu.memory_space<vmem>>, vector<16x512xbf16>,
    %c16_i32_77 = arith.constant 16 : i32
    %118 = tpu.dynamic_rotate %111 by %c16_i32_77 dim 1 : vector<16x512xf32>, i32 -> vector<16x512xf32>
    %c1_78 = arith.constant 1 : index
    %c0_79 = arith.constant 0 : index
    %119 = vector.load %arg2[%c1_78, %c0_79] : memref<9x512xf32, #tpu.memory_space<vmem>>, vector<1x512xf32>
    %120 = vector.broadcast %119 : vector<1x512xf32> to vector<16x512xf32>
    %121 = arith.mulf %118, %120 : vector<16x512xf32>
    %122 = arith.truncf %121 : vector<16x512xf32> to vector<16x512xbf16>
    %c16_80 = arith.constant 16 : index
    %c0_81 = arith.constant 0 : index
    %123 = vector.load %arg8[%c16_80, %c0_81] : memref<144x512xbf16, #tpu.memory_space<vmem>>, vector<16x512xbf16>
    tpu.vector_store %arg8[%c16_80, %c0_81], %122 {strides = array<i32>} : memref<144x512xbf16, #tpu.memory_space<vmem>>, vector<16x512xbf16>,
    %c15_i32_82 = arith.constant 15 : i32
    %124 = tpu.dynamic_rotate %111 by %c15_i32_82 dim 1 : vector<16x512xf32>, i32 -> vector<16x512xf32>
    %c2_83 = arith.constant 2 : index
    %c0_84 = arith.constant 0 : index
    %125 = vector.load %arg2[%c2_83, %c0_84] : memref<9x512xf32, #tpu.memory_space<vmem>>, vector<1x512xf32>
    %126 = vector.broadcast %125 : vector<1x512xf32> to vector<16x512xf32>
    %127 = arith.mulf %124, %126 : vector<16x512xf32>
    %128 = arith.truncf %127 : vector<16x512xf32> to vector<16x512xbf16>
    %c32_85 = arith.constant 32 : index
    %c0_86 = arith.constant 0 : index
    %129 = vector.load %arg8[%c32_85, %c0_86] : memref<144x512xbf16, #tpu.memory_space<vmem>>, vector<16x512xbf16>
    tpu.vector_store %arg8[%c32_85, %c0_86], %128 {strides = array<i32>} : memref<144x512xbf16, #tpu.memory_space<vmem>>, vector<16x512xbf16>,
    %c1_i32_87 = arith.constant 1 : i32
    %130 = tpu.dynamic_rotate %111 by %c1_i32_87 dim 1 : vector<16x512xf32>, i32 -> vector<16x512xf32>
    %c3_88 = arith.constant 3 : index
    %c0_89 = arith.constant 0 : index
    %131 = vector.load %arg2[%c3_88, %c0_89] : memref<9x512xf32, #tpu.memory_space<vmem>>, vector<1x512xf32>
    %132 = vector.broadcast %131 : vector<1x512xf32> to vector<16x512xf32>
    %133 = arith.mulf %130, %132 : vector<16x512xf32>
    %134 = arith.truncf %133 : vector<16x512xf32> to vector<16x512xbf16>
    %c48_90 = arith.constant 48 : index
    %c0_91 = arith.constant 0 : index
    %135 = vector.load %arg8[%c48_90, %c0_91] : memref<144x512xbf16, #tpu.memory_space<vmem>>, vector<16x512xbf16>
    tpu.vector_store %arg8[%c48_90, %c0_91], %134 {strides = array<i32>} : memref<144x512xbf16, #tpu.memory_space<vmem>>, vector<16x512xbf16>,
    %136 = arith.truncf %111 : vector<16x512xf32> to vector<16x512xbf16>
    %c64_92 = arith.constant 64 : index
    %c0_93 = arith.constant 0 : index
    %137 = vector.load %arg8[%c64_92, %c0_93] : memref<144x512xbf16, #tpu.memory_space<vmem>>, vector<16x512xbf16>
    tpu.vector_store %arg8[%c64_92, %c0_93], %136 {strides = array<i32>} : memref<144x512xbf16, #tpu.memory_space<vmem>>, vector<16x512xbf16>,
    %c511_i32 = arith.constant 511 : i32
    %138 = tpu.dynamic_rotate %111 by %c511_i32 dim 1 : vector<16x512xf32>, i32 -> vector<16x512xf32>
    %c5_94 = arith.constant 5 : index
    %c0_95 = arith.constant 0 : index
    %139 = vector.load %arg2[%c5_94, %c0_95] : memref<9x512xf32, #tpu.memory_space<vmem>>, vector<1x512xf32>
    %140 = vector.broadcast %139 : vector<1x512xf32> to vector<16x512xf32>
    %141 = arith.mulf %138, %140 : vector<16x512xf32>
    %142 = arith.truncf %141 : vector<16x512xf32> to vector<16x512xbf16>
    %c80_96 = arith.constant 80 : index
    %c0_97 = arith.constant 0 : index
    %143 = vector.load %arg8[%c80_96, %c0_97] : memref<144x512xbf16, #tpu.memory_space<vmem>>, vector<16x512xbf16>
    tpu.vector_store %arg8[%c80_96, %c0_97], %142 {strides = array<i32>} : memref<144x512xbf16, #tpu.memory_space<vmem>>, vector<16x512xbf16>,
    %c497_i32 = arith.constant 497 : i32
    %144 = tpu.dynamic_rotate %111 by %c497_i32 dim 1 : vector<16x512xf32>, i32 -> vector<16x512xf32>
    %c6_98 = arith.constant 6 : index
    %c0_99 = arith.constant 0 : index
    %145 = vector.load %arg2[%c6_98, %c0_99] : memref<9x512xf32, #tpu.memory_space<vmem>>, vector<1x512xf32>
    %146 = vector.broadcast %145 : vector<1x512xf32> to vector<16x512xf32>
    %147 = arith.mulf %144, %146 : vector<16x512xf32>
    %148 = arith.truncf %147 : vector<16x512xf32> to vector<16x512xbf16>
    %c96_100 = arith.constant 96 : index
    %c0_101 = arith.constant 0 : index
    %149 = vector.load %arg8[%c96_100, %c0_101] : memref<144x512xbf16, #tpu.memory_space<vmem>>, vector<16x512xbf16>
    tpu.vector_store %arg8[%c96_100, %c0_101], %148 {strides = array<i32>} : memref<144x512xbf16, #tpu.memory_space<vmem>>, vector<16x512xbf16>,
    %c496_i32 = arith.constant 496 : i32
    %150 = tpu.dynamic_rotate %111 by %c496_i32 dim 1 : vector<16x512xf32>, i32 -> vector<16x512xf32>
    %c7_102 = arith.constant 7 : index
    %c0_103 = arith.constant 0 : index
    %151 = vector.load %arg2[%c7_102, %c0_103] : memref<9x512xf32, #tpu.memory_space<vmem>>, vector<1x512xf32>
    %152 = vector.broadcast %151 : vector<1x512xf32> to vector<16x512xf32>
    %153 = arith.mulf %150, %152 : vector<16x512xf32>
    %154 = arith.truncf %153 : vector<16x512xf32> to vector<16x512xbf16>
    %c112_104 = arith.constant 112 : index
    %c0_105 = arith.constant 0 : index
    %155 = vector.load %arg8[%c112_104, %c0_105] : memref<144x512xbf16, #tpu.memory_space<vmem>>, vector<16x512xbf16>
    tpu.vector_store %arg8[%c112_104, %c0_105], %154 {strides = array<i32>} : memref<144x512xbf16, #tpu.memory_space<vmem>>, vector<16x512xbf16>,
    %c495_i32 = arith.constant 495 : i32
    %156 = tpu.dynamic_rotate %111 by %c495_i32 dim 1 : vector<16x512xf32>, i32 -> vector<16x512xf32>
    %c8_106 = arith.constant 8 : index
    %c0_107 = arith.constant 0 : index
    %157 = vector.load %arg2[%c8_106, %c0_107] : memref<9x512xf32, #tpu.memory_space<vmem>>, vector<1x512xf32>
    %158 = vector.broadcast %157 : vector<1x512xf32> to vector<16x512xf32>
    %159 = arith.mulf %156, %158 : vector<16x512xf32>
    %160 = arith.truncf %159 : vector<16x512xf32> to vector<16x512xbf16>
    %c128_108 = arith.constant 128 : index
    %c0_109 = arith.constant 0 : index
    %161 = vector.load %arg8[%c128_108, %c0_109] : memref<144x512xbf16, #tpu.memory_space<vmem>>, vector<16x512xbf16>
    tpu.vector_store %arg8[%c128_108, %c0_109], %160 {strides = array<i32>} : memref<144x512xbf16, #tpu.memory_space<vmem>>, vector<16x512xbf16>,
    %c0_110 = arith.constant 0 : index
    %c0_111 = arith.constant 0 : index
    %162 = vector.load %arg5[%c0_110, %c0_111] : memref<16x144xbf16, #tpu.memory_space<vmem>>, vector<16x144xbf16>
    %c0_112 = arith.constant 0 : index
    %c0_113 = arith.constant 0 : index
    %163 = vector.load %arg8[%c0_112, %c0_113] : memref<144x512xbf16, #tpu.memory_space<vmem>>, vector<144x512xbf16>
    %cst_114 = arith.constant dense<0.000000e+00> : vector<16x512xf32>
    %164 = tpu.matmul %162, %163, %cst_114 {dimension_numbers = #tpu.dot_dimension_numbers<[1], [0], [0], [1], [0, 0, 1, 1], [], []>} : vector<16x144xbf16>, vector<144x512xbf16>, vector<16x512xf32> -> vector<16x512xf32>
    %c0_115 = arith.constant 0 : index
    %c0_116 = arith.constant 0 : index
    %165 = vector.load %arg6[%c0_115, %c0_116] : memref<16x1xf32, #tpu.memory_space<vmem>>, vector<16x1xf32>
    %166 = vector.broadcast %165 : vector<16x1xf32> to vector<16x512xf32>
    %167 = arith.addf %164, %166 : vector<16x512xf32>
    %cst_117 = arith.constant 0.000000e+00 : f32
    %168 = vector.broadcast %cst_117 : f32 to vector<16x512xf32>
    %169 = arith.maximumf %167, %168 : vector<16x512xf32>
    %170 = vector.extract_strided_slice %169 {offsets = [0, 0], sizes = [8, 256], strides = [1, 1]} : vector<16x512xf32> to vector<8x256xf32>
    %c0_118 = arith.constant 0 : index
    %c0_119 = arith.constant 0 : index
    %c0_120 = arith.constant 0 : index
    %171 = vector.load %arg7[%c0_118, %c0_119, %c0_120] : memref<2x8x256xf32, #tpu.memory_space<vmem>>, vector<1x8x256xf32>
    %172 = vector.shape_cast %171 : vector<1x8x256xf32> to vector<8x256xf32>
    %173 = vector.shape_cast %170 : vector<8x256xf32> to vector<1x8x256xf32>
    tpu.vector_store %arg7[%c0_118, %c0_119, %c0_120], %173 {strides = array<i32>} : memref<2x8x256xf32, #tpu.memory_space<vmem>>, vector<1x8x256xf32>,
    %174 = vector.extract_strided_slice %169 {offsets = [0, 256], sizes = [8, 256], strides = [1, 1]} : vector<16x512xf32> to vector<8x256xf32>
    %c1_121 = arith.constant 1 : index
    %c0_122 = arith.constant 0 : index
    %c0_123 = arith.constant 0 : index
    %175 = vector.load %arg7[%c1_121, %c0_122, %c0_123] : memref<2x8x256xf32, #tpu.memory_space<vmem>>, vector<1x8x256xf32>
    %176 = vector.shape_cast %175 : vector<1x8x256xf32> to vector<8x256xf32>
    %177 = vector.shape_cast %174 : vector<8x256xf32> to vector<1x8x256xf32>
    tpu.vector_store %arg7[%c1_121, %c0_122, %c0_123], %177 {strides = array<i32>} : memref<2x8x256xf32, #tpu.memory_space<vmem>>, vector<1x8x256xf32>,
    return
  }
  func.func @transform_0(%arg0: i32) -> (i32, i32, i32) {
    %c0_i32 = arith.constant 0 : i32
    %c0_i32_0 = arith.constant 0 : i32
    %c0_i32_1 = arith.constant 0 : i32
    return %arg0, %c0_i32, %c0_i32_0 : i32, i32, i32
  }
  func.func @transform_1(%arg0: i32) -> (i32, i32) {
    %c0_i32 = arith.constant 0 : i32
    %c0_i32_0 = arith.constant 0 : i32
    %c0_i32_1 = arith.constant 0 : i32
    return %c0_i32, %c0_i32_0 : i32, i32
  }
  func.func @transform_2(%arg0: i32) -> (i32, i32) {
    %c0_i32 = arith.constant 0 : i32
    %c0_i32_0 = arith.constant 0 : i32
    %c0_i32_1 = arith.constant 0 : i32
    return %c0_i32, %c0_i32_0 : i32, i32
  }
  func.func @transform_3(%arg0: i32) -> (i32, i32) {
    %c0_i32 = arith.constant 0 : i32
    %c0_i32_0 = arith.constant 0 : i32
    %c0_i32_1 = arith.constant 0 : i32
    return %c0_i32, %c0_i32_0 : i32, i32
  }
  func.func @transform_4(%arg0: i32) -> (i32, i32) {
    %c0_i32 = arith.constant 0 : i32
    %c0_i32_0 = arith.constant 0 : i32
    %c0_i32_1 = arith.constant 0 : i32
    return %c0_i32, %c0_i32_0 : i32, i32
  }
  func.func @transform_5(%arg0: i32) -> (i32, i32) {
    %c0_i32 = arith.constant 0 : i32
    %c0_i32_0 = arith.constant 0 : i32
    %c0_i32_1 = arith.constant 0 : i32
    return %c0_i32, %c0_i32_0 : i32, i32
  }
  func.func @transform_6(%arg0: i32) -> (i32, i32, i32) {
    %c0_i32 = arith.constant 0 : i32
    %c0_i32_0 = arith.constant 0 : i32
    %c0_i32_1 = arith.constant 0 : i32
    return %arg0, %c0_i32, %c0_i32_0 : i32, i32, i32
  }
}

</mosaic_0001>

<bundles_post_ra>
// kernel: double_conv_forward.1
= control target key start
LH: loop header
LB: loop body
LE: loop exit
PB: predicated region body
PF: predicated region fallthrough
CT: control target
= control target key end

     0   :  { %s2447_s25 = smov 112   ;;  %s2448_s14 = smov 113   ;;  %v36_v8 = vlaneseq  ;;  %vm989_vm0 = vcmask 130048   ;;  %v2455_v30 = vmov 0   ;;  %s3398_s0 = inlined_call_operand.vmem [shape: f32[2,16,256], index: 0, kind: input, shape index: {}]   ;;  %s3399_s1 = inlined_call_operand.vmem [shape: f32[9,512], index: 1, kind: input, shape index: {}]   ;;  %s3400_s2 = inlined_call_operand.vmem [shape: bf16[16,144], index: 2, kind: input, shape index: {}]   ;;  %s3401_s3 = inlined_call_operand.vmem [shape: f32[16,1], index: 3, kind: input, shape index: {}]   ;;  %s3402_s4 = inlined_call_operand.vmem [shape: bf16[16,144], index: 4, kind: input, shape index: {}]   ;;  %s3403_s5 = inlined_call_operand.vmem [shape: f32[16,1], index: 5, kind: input, shape index: {}]   ;;  %s3404_s6 = inlined_call_operand.vmem [shape: f32[2,8,256], index: 6, kind: output, shape index: {}]  }
   0x1   :  { %v2494_v0 = vld [vmem:[%s3398_s0 + $0x8] sm:$0xff]  ;;  %v2499_v1 = vld [vmem:[%s3398_s0] sm:$0xff]  ;;  %v2508_v2 = vld [vmem:[%s3398_s0 + $0x18] sm:$0xff]  ;;  %s2450_s15 = smov 1   ;;  %s2451_s16 = smov 15   ;;  %2440 = vset.pattern.permute.xlu1 %v2455_v30  ;;  %2439 = vset.pattern.permute.xlu0 %v2455_v30 }
   0x2   :  { %311 = vrot.lane.b32.xlu1 %v2494_v0, %s2447_s25  ;;  %307 = vrot.lane.b32.xlu0 %v2499_v1, %s2447_s25  ;;  %v2513_v3 = vld [vmem:[%s3398_s0 + $0x10] sm:$0xff]  ;;  %v2527_v5 = vld [vmem:[%s3398_s0 + $0x20] sm:$0xff]  ;;  %s2452_s17 = smov 16   ;;  %s2453_s18 = smov 17   ;;  %v2639_v9 = vshrl.u32 %v36_v8, 7  ;;  %v2645_v10 = vand.u32 127, %v36_v8 }
   0x3   :  { %v2522_v4 = vld [vmem:[%s3398_s0 + $0x30] sm:$0xff]  ;;  %v2536_v6 = vld [vmem:[%s3398_s0 + $0x38] sm:$0xff]  ;;  %v2541_v7 = vld [vmem:[%s3398_s0 + $0x28] sm:$0xff]  ;;  %s2449_s0 = smov 127   ;;  %s2454_s21 = smov 111  }
   0x4   :  { %v2443_v11 = vld [vmem:[%s3400_s2 + $0x4] ss:$8 sps:$4 sm:$0xff]   ;;  %v2651_v12 = vsub.s32 1, %v2639_v9  ;;  %v2658_v13 = vsub.s32 0, %v2639_v9  ;;  %vm315_vm1 = vcmp.lt.s32.totalorder %v2645_v10, 112  ;;  %vm271_vm2 = vcmp.lt.s32.totalorder %v2645_v10, 113 }
   0x5   :  { %v2126_v14 = vld [vmem:[%s3399_s1 + $0x7] ss:$8 sm:$0x3]  ;;  %2199 = vmatprep.mubr.msk.bf16.mxu0 %vm989_vm0, %v2443_v11  ;;  %2200 = vmatprep.mubr.msk.bf16.mxu1 %vm989_vm0, %v2443_v11  ;;  %v2123_v49 = vld [vmem:[%s3399_s1 + $0x6] ss:$8 sm:$0x3] }
   0x6   :  { %313 = vrot.lane.b32.xlu1 %v2508_v2, %s2447_s25  ;;  %309 = vrot.lane.b32.xlu0 %v2513_v3, %s2447_s25  ;;  %v330_v17 = vrot.slane %v2126_v14, %v2651_v12  ;;  %v326_v19 = vrot.slane %v2126_v14, %v2658_v13  ;;  %v2155_v29 = vld [vmem:[%s3399_s1 + $0x7] ss:$8 sm:$0x3]  ;;  %v282_v54 = vrot.slane %v2123_v49, %v2658_v13  ;;  %v2152_v14 = vld [vmem:[%s3399_s1 + $0x6] ss:$8 sm:$0x3] }
   0x7   :  { %v687_v35 = vrot.slane %v2155_v29, %v2651_v12  ;;  %v683_v36 = vrot.slane %v2155_v29, %v2658_v13  ;;  %v789_v37 = vld [vmem:[%s3401_s3 + $0x8] sm:$0xff]  ;;  %v788_v40 = vld [vmem:[%s3401_s3] sm:$0xff]  ;;  %v286_v55 = vrot.slane %v2123_v49, %v2651_v12  ;;  %vm227_vm3 = vcmp.lt.s32.totalorder %v2645_v10, 127 }
   0x8   :  { %vm169_vm4 = vcmp.lt.s32.totalorder %v2645_v10, 1  ;;  %vm125_vm5 = vcmp.lt.s32.totalorder %v2645_v10, 15  ;;  %vm81_vm6 = vcmp.lt.s32.totalorder %v2645_v10, 16  ;;  %vm38_vm7 = vcmp.lt.s32.totalorder %v2645_v10, 17 }
   0x9   :  { %vm359_vm8 = vcmp.lt.s32.totalorder %v2645_v10, 111 }
   0xa   :  { %668 = vrot.lane.b32.xlu1 %v2522_v4, %s2447_s25  ;;  %666 = vrot.lane.b32.xlu0 %v2527_v5, %s2447_s25 }
   0xe   :  { %672 = vrot.lane.b32.xlu1 %v2536_v6, %s2447_s25  ;;  %670 = vrot.lane.b32.xlu0 %v2541_v7, %s2447_s25 }
  0x12   :  { %265 = vrot.lane.b32.xlu1 %v2513_v3, %s2448_s14  ;;  %263 = vrot.lane.b32.xlu0 %v2499_v1, %s2448_s14 }
  0x16   :  { %269 = vrot.lane.b32.xlu1 %v2508_v2, %s2448_s14  ;;  %267 = vrot.lane.b32.xlu0 %v2494_v0, %s2448_s14 }
  0x1a   :  { %626 = vrot.lane.b32.xlu1 %v2522_v4, %s2448_s14  ;;  %624 = vrot.lane.b32.xlu0 %v2527_v5, %s2448_s14 }
  0x1e   :  { %630 = vrot.lane.b32.xlu1 %v2536_v6, %s2448_s14  ;;  %628 = vrot.lane.b32.xlu0 %v2541_v7, %s2448_s14 }
  0x22   :  { %221 = vrot.lane.b32.xlu1 %v2513_v3, %s2449_s0  ;;  %219 = vrot.lane.b32.xlu0 %v2499_v1, %s2449_s0 }
  0x26   :  { %225 = vrot.lane.b32.xlu1 %v2508_v2, %s2449_s0  ;;  %223 = vrot.lane.b32.xlu0 %v2494_v0, %s2449_s0 }
  0x2a   :  { %584 = vrot.lane.b32.xlu1 %v2522_v4, %s2449_s0  ;;  %582 = vrot.lane.b32.xlu0 %v2527_v5, %s2449_s0 }
  0x2e   :  { %588 = vrot.lane.b32.xlu1 %v2536_v6, %s2449_s0  ;;  %586 = vrot.lane.b32.xlu0 %v2541_v7, %s2449_s0 }
  0x32   :  { %163 = vrot.lane.b32.xlu1 %v2513_v3, %s2450_s15  ;;  %161 = vrot.lane.b32.xlu0 %v2499_v1, %s2450_s15 }
  0x36   :  { %167 = vrot.lane.b32.xlu1 %v2508_v2, %s2450_s15  ;;  %165 = vrot.lane.b32.xlu0 %v2494_v0, %s2450_s15 }
  0x3a   :  { %528 = vrot.lane.b32.xlu1 %v2522_v4, %s2450_s15  ;;  %526 = vrot.lane.b32.xlu0 %v2527_v5, %s2450_s15 }
  0x3e   :  { %532 = vrot.lane.b32.xlu1 %v2536_v6, %s2450_s15  ;;  %530 = vrot.lane.b32.xlu0 %v2541_v7, %s2450_s15 }
  0x42   :  { %119 = vrot.lane.b32.xlu1 %v2513_v3, %s2451_s16  ;;  %117 = vrot.lane.b32.xlu0 %v2499_v1, %s2451_s16 }
  0x46   :  { %123 = vrot.lane.b32.xlu1 %v2508_v2, %s2451_s16  ;;  %121 = vrot.lane.b32.xlu0 %v2494_v0, %s2451_s16 }
  0x4a   :  { %486 = vrot.lane.b32.xlu1 %v2522_v4, %s2451_s16  ;;  %484 = vrot.lane.b32.xlu0 %v2527_v5, %s2451_s16 }
  0x4e   :  { %490 = vrot.lane.b32.xlu1 %v2536_v6, %s2451_s16  ;;  %488 = vrot.lane.b32.xlu0 %v2541_v7, %s2451_s16 }
  0x52   :  { %75 = vrot.lane.b32.xlu1 %v2513_v3, %s2452_s17  ;;  %73 = vrot.lane.b32.xlu0 %v2499_v1, %s2452_s17 }
  0x56   :  { %79 = vrot.lane.b32.xlu1 %v2508_v2, %s2452_s17  ;;  %77 = vrot.lane.b32.xlu0 %v2494_v0, %s2452_s17 }
  0x5a   :  { %444 = vrot.lane.b32.xlu1 %v2522_v4, %s2452_s17  ;;  %442 = vrot.lane.b32.xlu0 %v2527_v5, %s2452_s17 }
  0x5e   :  { %448 = vrot.lane.b32.xlu1 %v2536_v6, %s2452_s17  ;;  %446 = vrot.lane.b32.xlu0 %v2541_v7, %s2452_s17 }
  0x62   :  { %30 = vrot.lane.b32.xlu1 %v2513_v3, %s2453_s18  ;;  %28 = vrot.lane.b32.xlu0 %v2499_v1, %s2453_s18 }
  0x66   :  { %34 = vrot.lane.b32.xlu1 %v2508_v2, %s2453_s18  ;;  %32 = vrot.lane.b32.xlu0 %v2494_v0, %s2453_s18 }
  0x6a   :  { %402 = vrot.lane.b32.xlu1 %v2522_v4, %s2453_s18  ;;  %400 = vrot.lane.b32.xlu0 %v2527_v5, %s2453_s18 }
  0x6e   :  { %406 = vrot.lane.b32.xlu1 %v2536_v6, %s2453_s18  ;;  %404 = vrot.lane.b32.xlu0 %v2541_v7, %s2453_s18 }
  0x72   :  { %353 = vrot.lane.b32.xlu1 %v2513_v3, %s2454_s21  ;;  %351 = vrot.lane.b32.xlu0 %v2499_v1, %s2454_s21 }
  0x74   :  { %v312_v15 = vpop.permute.xlu1 %311  ;;  %v308_v16 = vpop.permute.xlu0 %307 }
  0x75   :  { %v318_v18 = vsel %vm315_vm1, %v312_v15, %v308_v16  ;;  %v316_v20 = vsel %vm315_vm1, %v308_v16, %v312_v15 }
  0x76   :  { %357 = vrot.lane.b32.xlu1 %v2508_v2, %s2454_s21  ;;  %355 = vrot.lane.b32.xlu0 %v2494_v0, %s2454_s21  ;;  %v334_v25 = vmul.f32 %v330_v17, %v318_v18  ;;  %v333_v27 = vmul.f32 %v326_v19, %v316_v20  ;;  %v645_v20 = vrot.slane %v2152_v14, %v2651_v12 }
  0x78   :  { %v314_v21 = vpop.permute.xlu1 %313  ;;  %v310_v22 = vpop.permute.xlu0 %309 }
  0x79   :  { %v317_v23 = vsel %vm315_vm1, %v310_v22, %v314_v21  ;;  %v319_v24 = vsel %vm315_vm1, %v314_v21, %v310_v22 }
  0x7a   :  { %710 = vrot.lane.b32.xlu1 %v2522_v4, %s2454_s21  ;;  %708 = vrot.lane.b32.xlu0 %v2527_v5, %s2454_s21  ;;  %v336_v26 = vmul.f32 %v330_v17, %v319_v24  ;;  %v335_v28 = vmul.f32 %v326_v19, %v317_v23  ;;  %v641_v19 = vrot.slane %v2152_v14, %v2658_v13 }
  0x7c   :  { %v669_v31 = vpop.permute.xlu1 %668  ;;  %v667_v32 = vpop.permute.xlu0 %666  ;;  %v2387_v33 = vpack.c.bf16 %v336_v26, %v334_v25  ;;  %v2386_v34 = vpack.c.bf16 %v335_v28, %v333_v27 }
  0x7e   :  { %714 = vrot.lane.b32.xlu1 %v2536_v6, %s2454_s21  ;;  %712 = vrot.lane.b32.xlu0 %v2541_v7, %s2454_s21 }
  0x7f   :  { %993 = vmatprep.subr.bf16.mxu0 %v2387_v33 }
  0x80   :  { %994 = vmatpush1.bf16.msra.mxu0 %v2386_v34  ;;  %v673_v38 = vpop.permute.xlu1 %672  ;;  %v671_v39 = vpop.permute.xlu0 %670 }
  0x81   :  { %v675_v41 = vsel %vm315_vm1, %v669_v31, %v673_v38  ;;  %v674_v42 = vsel %vm315_vm1, %v667_v32, %v671_v39  ;;  %v676_v43 = vsel %vm315_vm1, %v671_v39, %v667_v32  ;;  %v677_v44 = vsel %vm315_vm1, %v673_v38, %v669_v31  ;;  %v2120_v31 = vld [vmem:[%s3399_s1 + $0x5] ss:$8 sm:$0x3] }
  0x82   :  { %v691_v45 = vmul.f32 %v687_v35, %v676_v43  ;;  %v693_v46 = vmul.f32 %v687_v35, %v677_v44  ;;  %v690_v47 = vmul.f32 %v683_v36, %v674_v42  ;;  %v692_v48 = vmul.f32 %v683_v36, %v675_v41  ;;  %797 = vperm.xlu1 %2440, %v789_v37  }
  0x83   :  { %792 = vperm.xlu0 %2439, %v788_v40   ;;  %v238_v36 = vrot.slane %v2120_v31, %v2658_v13  ;;  %v242_v37 = vrot.slane %v2120_v31, %v2651_v12 }
  0x84   :  { %v266_v50 = vpop.permute.xlu1 %265  ;;  %v264_v51 = vpop.permute.xlu0 %263  ;;  %v2389_v52 = vpack.c.bf16 %v693_v46, %v691_v45  ;;  %v2388_v53 = vpack.c.bf16 %v692_v48, %v690_v47  ;;  %v2149_v48 = vld [vmem:[%s3399_s1 + $0x5] ss:$8 sm:$0x3] }
  0x86   :  { %1036 = vmatprep.subr.bf16.mxu1 %v2389_v52 }
  0x87   :  { %1037 = vmatpush1.bf16.msra.mxu1 %v2388_v53  ;;  %v2375_v53 = vpack.c.bf16 %v2508_v2, %v2494_v0 }
  0x88   :  { %v270_v56 = vpop.permute.xlu1 %269  ;;  %v268_v57 = vpop.permute.xlu0 %267 }
  0x89   :  { %v273_v58 = vsel %vm271_vm2, %v266_v50, %v270_v56  ;;  %v275_v59 = vsel %vm271_vm2, %v270_v56, %v266_v50  ;;  %v272_v60 = vsel %vm271_vm2, %v264_v51, %v268_v57  ;;  %v274_v61 = vsel %vm271_vm2, %v268_v57, %v264_v51 }
  0x8a   :  { %v291_v62 = vmul.f32 %v282_v54, %v273_v58  ;;  %v292_v63 = vmul.f32 %v286_v55, %v275_v59  ;;  %v289_v8 = vmul.f32 %v282_v54, %v272_v60  ;;  %v290_v11 = vmul.f32 %v286_v55, %v274_v61 }
  0x8b   :  { %v599_v54 = vrot.slane %v2149_v48, %v2658_v13  ;;  %v603_v55 = vrot.slane %v2149_v48, %v2651_v12  ;;  %v2374_v56 = vpack.c.bf16 %v2513_v3, %v2499_v1  ;;  %v2115_v1 = vld [vmem:[%s3399_s1 + $0x3] ss:$8 sm:$0x3] }
  0x8c   :  { %v627_v15 = vpop.permute.xlu1 %626  ;;  %v625_v16 = vpop.permute.xlu0 %624  ;;  %v2383_v17 = vpack.c.bf16 %v292_v63, %v290_v11  ;;  %v2382_v18 = vpack.c.bf16 %v291_v62, %v289_v8 }
  0x8e   :  { %995 = vmatprep.subr.bf16.mxu0 %v2383_v17  ;;  %v180_v17 = vrot.slane %v2115_v1, %v2658_v13 }
  0x8f   :  { %996 = vmatpush1.bf16.msra.mxu0 %v2382_v18  ;;  %v184_v18 = vrot.slane %v2115_v1, %v2651_v12 }
  0x90   :  { %v631_v21 = vpop.permute.xlu1 %630  ;;  %v629_v22 = vpop.permute.xlu0 %628 }
  0x91   :  { %v633_v23 = vsel %vm271_vm2, %v627_v15, %v631_v21  ;;  %v635_v24 = vsel %vm271_vm2, %v631_v21, %v627_v15  ;;  %v632_v25 = vsel %vm271_vm2, %v625_v16, %v629_v22  ;;  %v634_v26 = vsel %vm271_vm2, %v629_v22, %v625_v16 }
  0x92   :  { %v650_v27 = vmul.f32 %v641_v19, %v633_v23  ;;  %v651_v28 = vmul.f32 %v645_v20, %v635_v24  ;;  %v648_v29 = vmul.f32 %v641_v19, %v632_v25  ;;  %v649_v30 = vmul.f32 %v645_v20, %v634_v26 }
  0x93   :  { %v2377_v16 = vpack.c.bf16 %v2536_v6, %v2541_v7  ;;  %v2376_v19 = vpack.c.bf16 %v2522_v4, %v2527_v5  ;;  %v2144_v4 = vld [vmem:[%s3399_s1 + $0x3] ss:$8 sm:$0x3] }
  0x94   :  { %v222_v32 = vpop.permute.xlu1 %221  ;;  %v220_v33 = vpop.permute.xlu0 %219  ;;  %v2385_v34 = vpack.c.bf16 %v651_v28, %v649_v30  ;;  %v2384_v35 = vpack.c.bf16 %v650_v27, %v648_v29  ;;  %v543_v31 = vrot.slane %v2144_v4, %v2658_v13 }
  0x96   :  { %1038 = vmatprep.subr.bf16.mxu1 %v2385_v34 }
  0x97   :  { %1039 = vmatpush1.bf16.msra.mxu1 %v2384_v35 }
  0x98   :  { %v226_v38 = vpop.permute.xlu1 %225  ;;  %v224_v39 = vpop.permute.xlu0 %223 }
  0x99   :  { %v229_v40 = vsel %vm227_vm3, %v222_v32, %v226_v38  ;;  %v231_v41 = vsel %vm227_vm3, %v226_v38, %v222_v32  ;;  %v228_v42 = vsel %vm227_vm3, %v220_v33, %v224_v39  ;;  %v230_v43 = vsel %vm227_vm3, %v224_v39, %v220_v33 }
  0x9a   :  { %v247_v44 = vmul.f32 %v238_v36, %v229_v40  ;;  %v248_v45 = vmul.f32 %v242_v37, %v231_v41  ;;  %v245_v46 = vmul.f32 %v238_v36, %v228_v42  ;;  %v246_v47 = vmul.f32 %v242_v37, %v230_v43  ;;  %v2112_v43 = vld [vmem:[%s3399_s1 + $0x2] ss:$8 sm:$0x3] }
  0x9b   :  { %v547_v32 = vrot.slane %v2144_v4, %v2651_v12  ;;  %v136_v48 = vrot.slane %v2112_v43, %v2658_v13 }
  0x9c   :  { %v585_v49 = vpop.permute.xlu1 %584  ;;  %v583_v50 = vpop.permute.xlu0 %582  ;;  %v2379_v51 = vpack.c.bf16 %v248_v45, %v246_v47  ;;  %v2378_v52 = vpack.c.bf16 %v247_v44, %v245_v46 }
  0x9e   :  { %997 = vmatprep.subr.bf16.mxu0 %v2379_v51 }
  0x9f   :  { %998 = vmatpush1.bf16.msra.mxu0 %v2378_v52 }
  0xa0   :  { %v589_v57 = vpop.permute.xlu1 %588  ;;  %v587_v58 = vpop.permute.xlu0 %586  ;;  %999 = vmatprep.subr.bf16.mxu0 %v2375_v53 }
  0xa1   :  { %v591_v59 = vsel %vm227_vm3, %v585_v49, %v589_v57  ;;  %v593_v60 = vsel %vm227_vm3, %v589_v57, %v585_v49  ;;  %v590_v0 = vsel %vm227_vm3, %v583_v50, %v587_v58  ;;  %v592_v2 = vsel %vm227_vm3, %v587_v58, %v583_v50 }
  0xa2   :  { %v608_v61 = vmul.f32 %v599_v54, %v591_v59  ;;  %v609_v62 = vmul.f32 %v603_v55, %v593_v60  ;;  %v606_v63 = vmul.f32 %v599_v54, %v590_v0  ;;  %v607_v8 = vmul.f32 %v603_v55, %v592_v2  ;;  %v2141_v60 = vld [vmem:[%s3399_s1 + $0x2] ss:$8 sm:$0x3] }
  0xa3   :  { %1000 = vmatpush1.bf16.msra.mxu0 %v2374_v56  ;;  %v140_v49 = vrot.slane %v2112_v43, %v2651_v12 }
  0xa4   :  { %v164_v3 = vpop.permute.xlu1 %163  ;;  %v162_v11 = vpop.permute.xlu0 %161  ;;  %v2381_v14 = vpack.c.bf16 %v609_v62, %v607_v8  ;;  %v2380_v15 = vpack.c.bf16 %v608_v61, %v606_v63  ;;  %v501_v63 = vrot.slane %v2141_v60, %v2658_v13  ;;  %v505_v8 = vrot.slane %v2141_v60, %v2651_v12 }
  0xa6   :  { %1040 = vmatprep.subr.bf16.mxu1 %v2381_v14 }
  0xa7   :  { %1041 = vmatpush1.bf16.msra.mxu1 %v2380_v15 }
  0xa8   :  { %v168_v20 = vpop.permute.xlu1 %167  ;;  %v166_v21 = vpop.permute.xlu0 %165  ;;  %1042 = vmatprep.subr.bf16.mxu1 %v2377_v16 }
  0xa9   :  { %v171_v22 = vsel %vm169_vm4, %v164_v3, %v168_v20  ;;  %v173_v6 = vsel %vm169_vm4, %v168_v20, %v164_v3  ;;  %v170_v7 = vsel %vm169_vm4, %v162_v11, %v166_v21  ;;  %v172_v23 = vsel %vm169_vm4, %v166_v21, %v162_v11  ;;  %v2109_v21 = vld [vmem:[%s3399_s1 + $0x1] ss:$8 sm:$0x3] }
  0xaa   :  { %v189_v24 = vmul.f32 %v180_v17, %v173_v6  ;;  %v190_v25 = vmul.f32 %v184_v18, %v171_v22  ;;  %v187_v26 = vmul.f32 %v180_v17, %v172_v23  ;;  %v188_v27 = vmul.f32 %v184_v18, %v170_v7 }
  0xab   :  { %1043 = vmatpush1.bf16.msra.mxu1 %v2376_v19 }
  0xac   :  { %v529_v5 = vpop.permute.xlu1 %528  ;;  %v527_v28 = vpop.permute.xlu0 %526  ;;  %v2371_v29 = vpack.c.bf16 %v190_v25, %v188_v27  ;;  %v2370_v30 = vpack.c.bf16 %v189_v24, %v187_v26  ;;  %v92_v24 = vrot.slane %v2109_v21, %v2658_v13  ;;  %v96_v25 = vrot.slane %v2109_v21, %v2651_v12 }
  0xae   :  { %1001 = vmatprep.subr.bf16.mxu0 %v2371_v29 }
  0xaf   :  { %1002 = vmatpush1.bf16.msra.mxu0 %v2370_v30 }
  0xb0   :  { %v533_v33 = vpop.permute.xlu1 %532  ;;  %v531_v34 = vpop.permute.xlu0 %530 }
  0xb1   :  { %v535_v35 = vsel %vm169_vm4, %v529_v5, %v533_v33  ;;  %v537_v36 = vsel %vm169_vm4, %v533_v33, %v529_v5  ;;  %v534_v37 = vsel %vm169_vm4, %v527_v28, %v531_v34  ;;  %v536_v38 = vsel %vm169_vm4, %v531_v34, %v527_v28  ;;  %v2138_v34 = vld [vmem:[%s3399_s1 + $0x1] ss:$8 sm:$0x3] }
  0xb2   :  { %v552_v39 = vmul.f32 %v543_v31, %v537_v36  ;;  %v553_v40 = vmul.f32 %v547_v32, %v535_v35  ;;  %v550_v41 = vmul.f32 %v543_v31, %v536_v38  ;;  %v551_v42 = vmul.f32 %v547_v32, %v534_v37 }
  0xb4   :  { %v120_v44 = vpop.permute.xlu1 %119  ;;  %v118_v45 = vpop.permute.xlu0 %117  ;;  %v2373_v46 = vpack.c.bf16 %v553_v40, %v551_v42  ;;  %v2372_v47 = vpack.c.bf16 %v552_v39, %v550_v41  ;;  %v459_v39 = vrot.slane %v2138_v34, %v2658_v13  ;;  %v463_v40 = vrot.slane %v2138_v34, %v2651_v12 }
  0xb6   :  { %1044 = vmatprep.subr.bf16.mxu1 %v2373_v46 }
  0xb7   :  { %1045 = vmatpush1.bf16.msra.mxu1 %v2372_v47 }
  0xb8   :  { %v124_v50 = vpop.permute.xlu1 %123  ;;  %v122_v51 = vpop.permute.xlu0 %121 }
  0xb9   :  { %v127_v52 = vsel %vm125_vm5, %v120_v44, %v124_v50  ;;  %v129_v53 = vsel %vm125_vm5, %v124_v50, %v120_v44  ;;  %v126_v54 = vsel %vm125_vm5, %v118_v45, %v122_v51  ;;  %v128_v55 = vsel %vm125_vm5, %v122_v51, %v118_v45  ;;  %v43_v51 = vld [vmem:[%s3399_s1] ss:$8 sm:$0x3] }
  0xba   :  { %v145_v56 = vmul.f32 %v136_v48, %v129_v53  ;;  %v146_v57 = vmul.f32 %v140_v49, %v127_v52  ;;  %v143_v58 = vmul.f32 %v136_v48, %v128_v55  ;;  %v144_v59 = vmul.f32 %v140_v49, %v126_v54 }
  0xbc   :  { %v487_v0 = vpop.permute.xlu1 %486  ;;  %v485_v2 = vpop.permute.xlu0 %484  ;;  %v2367_v61 = vpack.c.bf16 %v146_v57, %v144_v59  ;;  %v2366_v62 = vpack.c.bf16 %v145_v56, %v143_v58  ;;  %v48_v56 = vrot.slane %v43_v51, %v2658_v13  ;;  %v52_v57 = vrot.slane %v43_v51, %v2651_v12 }
  0xbe   :  { %1003 = vmatprep.subr.bf16.mxu0 %v2367_v61 }
  0xbf   :  { %1004 = vmatpush1.bf16.msra.mxu0 %v2366_v62 }
  0xc0   :  { %v491_v1 = vpop.permute.xlu1 %490  ;;  %v489_v3 = vpop.permute.xlu0 %488 }
  0xc1   :  { %v493_v11 = vsel %vm125_vm5, %v487_v0, %v491_v1  ;;  %v495_v14 = vsel %vm125_vm5, %v491_v1, %v487_v0  ;;  %v492_v15 = vsel %vm125_vm5, %v485_v2, %v489_v3  ;;  %v494_v16 = vsel %vm125_vm5, %v489_v3, %v485_v2  ;;  %v412_v3 = vld [vmem:[%s3399_s1] ss:$8 sm:$0x3] }
  0xc2   :  { %v510_v17 = vmul.f32 %v501_v63, %v495_v14  ;;  %v511_v18 = vmul.f32 %v505_v8, %v493_v11  ;;  %v508_v19 = vmul.f32 %v501_v63, %v494_v16  ;;  %v509_v20 = vmul.f32 %v505_v8, %v492_v15 }
  0xc4   :  { %v76_v22 = vpop.permute.xlu1 %75  ;;  %v74_v6 = vpop.permute.xlu0 %73  ;;  %v2369_v7 = vpack.c.bf16 %v511_v18, %v509_v20  ;;  %v2368_v23 = vpack.c.bf16 %v510_v17, %v508_v19  ;;  %v417_v17 = vrot.slane %v412_v3, %v2658_v13  ;;  %v421_v18 = vrot.slane %v412_v3, %v2651_v12 }
  0xc6   :  { %1046 = vmatprep.subr.bf16.mxu1 %v2369_v7 }
  0xc7   :  { %1047 = vmatpush1.bf16.msra.mxu1 %v2368_v23 }
  0xc8   :  { %v80_v26 = vpop.permute.xlu1 %79  ;;  %v78_v27 = vpop.permute.xlu0 %77 }
  0xc9   :  { %v83_v4 = vsel %vm81_vm6, %v76_v22, %v80_v26  ;;  %v85_v5 = vsel %vm81_vm6, %v80_v26, %v76_v22  ;;  %v82_v28 = vsel %vm81_vm6, %v74_v6, %v78_v27  ;;  %v84_v29 = vsel %vm81_vm6, %v78_v27, %v74_v6  ;;  %v2129_v27 = vld [vmem:[%s3399_s1 + $0x20] ss:$8 sm:$0x3] }
  0xca   :  { %v101_v30 = vmul.f32 %v92_v24, %v85_v5  ;;  %v102_v31 = vmul.f32 %v96_v25, %v83_v4  ;;  %v99_v32 = vmul.f32 %v92_v24, %v84_v29  ;;  %v100_v33 = vmul.f32 %v96_v25, %v82_v28 }
  0xcc   :  { %v445_v35 = vpop.permute.xlu1 %444  ;;  %v443_v36 = vpop.permute.xlu0 %442  ;;  %v2363_v37 = vpack.c.bf16 %v102_v31, %v100_v33  ;;  %v2362_v38 = vpack.c.bf16 %v101_v30, %v99_v32  ;;  %v370_v30 = vrot.slane %v2129_v27, %v2658_v13  ;;  %v374_v31 = vrot.slane %v2129_v27, %v2651_v12 }
  0xce   :  { %1005 = vmatprep.subr.bf16.mxu0 %v2363_v37 }
  0xcf   :  { %1006 = vmatpush1.bf16.msra.mxu0 %v2362_v38 }
  0xd0   :  { %v449_v41 = vpop.permute.xlu1 %448  ;;  %v447_v42 = vpop.permute.xlu0 %446 }
  0xd1   :  { %v451_v43 = vsel %vm81_vm6, %v445_v35, %v449_v41  ;;  %v453_v44 = vsel %vm81_vm6, %v449_v41, %v445_v35  ;;  %v450_v45 = vsel %vm81_vm6, %v443_v36, %v447_v42  ;;  %v452_v46 = vsel %vm81_vm6, %v447_v42, %v443_v36  ;;  %v2158_v42 = vld [vmem:[%s3399_s1 + $0x20] ss:$8 sm:$0x3] }
  0xd2   :  { %v468_v47 = vmul.f32 %v459_v39, %v453_v44  ;;  %v469_v48 = vmul.f32 %v463_v40, %v451_v43  ;;  %v466_v49 = vmul.f32 %v459_v39, %v452_v46  ;;  %v467_v50 = vmul.f32 %v463_v40, %v450_v45 }
  0xd4   :  { %v31_v52 = vpop.permute.xlu1 %30  ;;  %v29_v53 = vpop.permute.xlu0 %28  ;;  %v2365_v54 = vpack.c.bf16 %v469_v48, %v467_v50  ;;  %v2364_v55 = vpack.c.bf16 %v468_v47, %v466_v49  ;;  %v725_v47 = vrot.slane %v2158_v42, %v2658_v13  ;;  %v729_v48 = vrot.slane %v2158_v42, %v2651_v12  ;;  %v2441_v49 = vld [vmem:[%s3400_s2] ss:$8 sps:$4 sm:$0xff]  }
  0xd6   :  { %1048 = vmatprep.subr.bf16.mxu1 %v2365_v54 }
  0xd7   :  { %1049 = vmatpush1.bf16.msra.mxu1 %v2364_v55 }
  0xd8   :  { %v35_v58 = vpop.permute.xlu1 %34  ;;  %v33_v59 = vpop.permute.xlu0 %32 }
  0xd9   :  { %v40_v60 = vsel %vm38_vm7, %v31_v52, %v35_v58  ;;  %v42_v0 = vsel %vm38_vm7, %v35_v58, %v31_v52  ;;  %v39_v2 = vsel %vm38_vm7, %v29_v53, %v33_v59  ;;  %v41_v61 = vsel %vm38_vm7, %v33_v59, %v29_v53 }
  0xda   :  { %v57_v62 = vmul.f32 %v48_v56, %v42_v0  ;;  %v58_v63 = vmul.f32 %v52_v57, %v40_v60  ;;  %v55_v8 = vmul.f32 %v48_v56, %v41_v61  ;;  %v56_v1 = vmul.f32 %v52_v57, %v39_v2 }
  0xdc   :  { %v403_v11 = vpop.permute.xlu1 %402  ;;  %v401_v14 = vpop.permute.xlu0 %400  ;;  %v2359_v15 = vpack.c.bf16 %v58_v63, %v56_v1  ;;  %v2358_v16 = vpack.c.bf16 %v57_v62, %v55_v8 }
  0xde   :  { %1007 = vmatprep.subr.bf16.mxu0 %v2359_v15 }
  0xdf   :  { %1008 = vmatpush1.bf16.msra.mxu0 %v2358_v16 }
  0xe0   :  { %v407_v19 = vpop.permute.xlu1 %406  ;;  %v405_v20 = vpop.permute.xlu0 %404 }
  0xe1   :  { %v409_v21 = vsel %vm38_vm7, %v403_v11, %v407_v19  ;;  %v411_v22 = vsel %vm38_vm7, %v407_v19, %v403_v11  ;;  %v408_v6 = vsel %vm38_vm7, %v401_v14, %v405_v20  ;;  %v410_v7 = vsel %vm38_vm7, %v405_v20, %v401_v14 }
  0xe2   :  { %v426_v23 = vmul.f32 %v417_v17, %v411_v22  ;;  %v427_v24 = vmul.f32 %v421_v18, %v409_v21  ;;  %v424_v25 = vmul.f32 %v417_v17, %v410_v7  ;;  %v425_v26 = vmul.f32 %v421_v18, %v408_v6 }
  0xe4   :  { %v354_v4 = vpop.permute.xlu1 %353  ;;  %v352_v5 = vpop.permute.xlu0 %351  ;;  %v2361_v28 = vpack.c.bf16 %v427_v24, %v425_v26  ;;  %v2360_v29 = vpack.c.bf16 %v426_v23, %v424_v25 }
  0xe6   :  { %1050 = vmatprep.subr.bf16.mxu1 %v2361_v28 }
  0xe7   :  { %1051 = vmatpush1.bf16.msra.mxu1 %v2360_v29 }
  0xe8   :  { %v358_v32 = vpop.permute.xlu1 %357  ;;  %v356_v33 = vpop.permute.xlu0 %355 }
  0xe9   :  { %v361_v34 = vsel %vm359_vm8, %v354_v4, %v358_v32  ;;  %v363_v35 = vsel %vm359_vm8, %v358_v32, %v354_v4  ;;  %v360_v36 = vsel %vm359_vm8, %v352_v5, %v356_v33  ;;  %v362_v37 = vsel %vm359_vm8, %v356_v33, %v352_v5  ;;  %v2444_v33 = vld [vmem:[%s3402_s4 + $0x4] ss:$8 sps:$4 sm:$0xff]  }
  0xea   :  { %v379_v38 = vmul.f32 %v370_v30, %v361_v34  ;;  %v380_v39 = vmul.f32 %v374_v31, %v363_v35  ;;  %v377_v40 = vmul.f32 %v370_v30, %v360_v36  ;;  %v378_v41 = vmul.f32 %v374_v31, %v362_v37  ;;  %v1809_v36 = vld [vmem:[%s3403_s5] sm:$0xff] }
  0xec   :  { %v711_v43 = vpop.permute.xlu1 %710  ;;  %v709_v44 = vpop.permute.xlu0 %708  ;;  %v2391_v45 = vpack.c.bf16 %v380_v39, %v378_v41  ;;  %v2390_v46 = vpack.c.bf16 %v379_v38, %v377_v40 }
  0xee   :  { %1023 = vmatprep.subr.bf16.mxu0 %v2391_v45 }
  0xef   :  { %1024 = vmatpush2.bf16.msra.mxu0 %v2390_v46 }
  0xf0   :  { %v715_v50 = vpop.permute.xlu1 %714  ;;  %v713_v51 = vpop.permute.xlu0 %712 }
  0xf1   :  { %v717_v52 = vsel %vm359_vm8, %v711_v43, %v715_v50  ;;  %v719_v53 = vsel %vm359_vm8, %v715_v50, %v711_v43  ;;  %v716_v54 = vsel %vm359_vm8, %v709_v44, %v713_v51  ;;  %v718_v55 = vsel %vm359_vm8, %v713_v51, %v709_v44 }
  0xf2   :  { %v734_v56 = vmul.f32 %v725_v47, %v717_v52  ;;  %v735_v57 = vmul.f32 %v729_v48, %v719_v53  ;;  %v732_v58 = vmul.f32 %v725_v47, %v716_v54  ;;  %v733_v59 = vmul.f32 %v729_v48, %v718_v55  ;;  %1026 = vmatmul.mubr.bf16.vlgmr.msra.gmra.mxu0 %v2441_v49 }
  0xf3   :  { %2282 = vmatprep.mubr.msk.bf16.mxu0 %vm989_vm0, %v2444_v33 }
  0xf4   :  { %v2393_v60 = vpack.c.bf16 %v735_v57, %v733_v59  ;;  %v2392_v0 = vpack.c.bf16 %v734_v56, %v732_v58 }
  0xf6   :  { %1066 = vmatprep.subr.bf16.mxu1 %v2393_v60 }
  0xf7   :  { %1067 = vmatpush2.bf16.msra.mxu1 %v2392_v0 }
  0xfa   :  { %1069 = vmatmul.mubr.bf16.vlgmr.msra.gmra.mxu1 %v2441_v49 }
  0xfb   :  { %2283 = vmatprep.mubr.msk.bf16.mxu1 %vm989_vm0, %v2444_v33 }
  0xfd   :  { %v798_v8 = vpop.permute.xlu1 %797 }
  0xfe   :  { %v793_v2 = vpop.permute.xlu0 %792 }
 0x1b2   :  { %v1027_v61 = vpop.f32.mrf.mxu0 }
 0x1b3   :  { %v1028_v62 = vadd.f32 %v1027_v61, %v793_v2  ;;  %v2234_v61 = vld [vmem:[%s3399_s1 + $0x7] ss:$8 sm:$0xf] }
 0x1b4   :  { %v1029_v63 = vpop.f32.mrf.mxu0 }
 0x1b5   :  { %v2907_v1 = vmax.f32 %v1028_v62, 0.0  ;;  %v1030_v7 = vadd.f32 %v1029_v63, %v793_v2 }
 0x1b6   :  { %v1031_v3 = vpop.f32.mrf.mxu0 }
 0x1b7   :  { %v1032_v11 = vadd.f32 %v1031_v3, %v798_v8  ;;  %1607 = vrot.lane.b32.xlu1 %v2907_v1, %s2447_s25  ;;  %v2981_v24 = vmax.f32 %v1030_v7, 0.0  ;;  %v3130_v3 = vsub.s32 3, %v2639_v9 }
 0x1b8   :  { %v1033_v23 = vpop.f32.mrf.mxu0 }
 0x1b9   :  { %v2911_v14 = vmax.f32 %v1032_v11, 0.0  ;;  %v1034_v25 = vadd.f32 %v1033_v23, %v798_v8  ;;  %v1636_v11 = vrot.slane %v2234_v61, %v2658_v13 }
 0x1ba   :  { %v1070_v15 = vpop.f32.mrf.mxu1 }
 0x1bb   :  { %v1071_v16 = vadd.f32 %v1070_v15, %v793_v2  ;;  %1609 = vrot.lane.b32.xlu0 %v2911_v14, %s2447_s25  ;;  %v2987_v4 = vmax.f32 %v1034_v25, 0.0  ;;  %v1640_v15 = vrot.slane %v2234_v61, %v2651_v12  ;;  %v1648_v25 = vrot.slane %v2234_v61, %v3130_v3 }
 0x1bc   :  { %v1072_v18 = vpop.f32.mrf.mxu1 }
 0x1bd   :  { %v2917_v19 = vmax.f32 %v1071_v16, 0.0  ;;  %v1073_v26 = vadd.f32 %v1072_v18, %v793_v2 }
 0x1be   :  { %v1074_v20 = vpop.f32.mrf.mxu1 }
 0x1bf   :  { %v1075_v21 = vadd.f32 %v1074_v20, %v798_v8  ;;  %1615 = vrot.lane.b32.xlu1 %v2917_v19, %s2447_s25  ;;  %v2989_v5 = vmax.f32 %v1073_v26, 0.0 }
 0x1c0   :  { %v1076_v27 = vpop.f32.mrf.mxu1 }
 0x1c1   :  { %v2921_v22 = vmax.f32 %v1075_v21, 0.0  ;;  %v1077_v28 = vadd.f32 %v1076_v27, %v798_v8  ;;  %v3127_v8 = vsub.s32 2, %v2639_v9 }
 0x1c3   :  { %1617 = vrot.lane.b32.xlu0 %v2921_v22, %s2447_s25  ;;  %1525 = vrot.lane.b32.xlu1 %v2907_v1, %s2448_s14  ;;  %v2995_v29 = vmax.f32 %v1077_v28, 0.0  ;;  %v1644_v23 = vrot.slane %v2234_v61, %v3127_v8 }
 0x1c7   :  { %1527 = vrot.lane.b32.xlu0 %v2911_v14, %s2448_s14  ;;  %1533 = vrot.lane.b32.xlu1 %v2917_v19, %s2448_s14 }
 0x1cb   :  { %1535 = vrot.lane.b32.xlu0 %v2921_v22, %s2448_s14  ;;  %1443 = vrot.lane.b32.xlu1 %v2907_v1, %s2449_s0 }
 0x1cf   :  { %1445 = vrot.lane.b32.xlu0 %v2911_v14, %s2449_s0  ;;  %1451 = vrot.lane.b32.xlu1 %v2917_v19, %s2449_s0 }
 0x1d3   :  { %1453 = vrot.lane.b32.xlu0 %v2921_v22, %s2449_s0  ;;  %1333 = vrot.lane.b32.xlu1 %v2907_v1, %s2450_s15 }
 0x1d7   :  { %1335 = vrot.lane.b32.xlu0 %v2911_v14, %s2450_s15  ;;  %1341 = vrot.lane.b32.xlu1 %v2917_v19, %s2450_s15 }
 0x1db   :  { %1343 = vrot.lane.b32.xlu0 %v2921_v22, %s2450_s15  ;;  %1251 = vrot.lane.b32.xlu1 %v2907_v1, %s2451_s16 }
 0x1df   :  { %1253 = vrot.lane.b32.xlu0 %v2911_v14, %s2451_s16  ;;  %1259 = vrot.lane.b32.xlu1 %v2917_v19, %s2451_s16 }
 0x1e3   :  { %1261 = vrot.lane.b32.xlu0 %v2921_v22, %s2451_s16  ;;  %1169 = vrot.lane.b32.xlu1 %v2907_v1, %s2452_s17 }
 0x1e7   :  { %1171 = vrot.lane.b32.xlu0 %v2911_v14, %s2452_s17  ;;  %1177 = vrot.lane.b32.xlu1 %v2917_v19, %s2452_s17 }
 0x1eb   :  { %1179 = vrot.lane.b32.xlu0 %v2921_v22, %s2452_s17  ;;  %1087 = vrot.lane.b32.xlu1 %v2907_v1, %s2453_s18 }
 0x1ef   :  { %1089 = vrot.lane.b32.xlu0 %v2911_v14, %s2453_s18  ;;  %1095 = vrot.lane.b32.xlu1 %v2917_v19, %s2453_s18 }
 0x1f3   :  { %1097 = vrot.lane.b32.xlu0 %v2921_v22, %s2453_s18  ;;  %1689 = vrot.lane.b32.xlu1 %v2907_v1, %s2454_s21 }
 0x1f7   :  { %1691 = vrot.lane.b32.xlu0 %v2911_v14, %s2454_s21  ;;  %1697 = vrot.lane.b32.xlu1 %v2917_v19, %s2454_s21 }
 0x1fb   :  { %1699 = vrot.lane.b32.xlu0 %v2921_v22, %s2454_s21  ;;  %1611 = vrot.lane.b32.xlu1 %v2981_v24, %s2447_s25 }
 0x1ff   :  { %1613 = vrot.lane.b32.xlu0 %v2987_v4, %s2447_s25  ;;  %1619 = vrot.lane.b32.xlu1 %v2989_v5, %s2447_s25 }
 0x203   :  { %1621 = vrot.lane.b32.xlu0 %v2995_v29, %s2447_s25  ;;  %1529 = vrot.lane.b32.xlu1 %v2981_v24, %s2448_s14 }
 0x207   :  { %1531 = vrot.lane.b32.xlu0 %v2987_v4, %s2448_s14  ;;  %1537 = vrot.lane.b32.xlu1 %v2989_v5, %s2448_s14 }
 0x20b   :  { %1539 = vrot.lane.b32.xlu0 %v2995_v29, %s2448_s14  ;;  %1447 = vrot.lane.b32.xlu1 %v2981_v24, %s2449_s0 }
 0x20f   :  { %1449 = vrot.lane.b32.xlu0 %v2987_v4, %s2449_s0  ;;  %1455 = vrot.lane.b32.xlu1 %v2989_v5, %s2449_s0 }
 0x213   :  { %1457 = vrot.lane.b32.xlu0 %v2995_v29, %s2449_s0  ;;  %1337 = vrot.lane.b32.xlu1 %v2981_v24, %s2450_s15 }
 0x217   :  { %1339 = vrot.lane.b32.xlu0 %v2987_v4, %s2450_s15  ;;  %1345 = vrot.lane.b32.xlu1 %v2989_v5, %s2450_s15 }
 0x21b   :  { %1347 = vrot.lane.b32.xlu0 %v2995_v29, %s2450_s15  ;;  %1255 = vrot.lane.b32.xlu1 %v2981_v24, %s2451_s16 }
 0x21f   :  { %1257 = vrot.lane.b32.xlu0 %v2987_v4, %s2451_s16  ;;  %1263 = vrot.lane.b32.xlu1 %v2989_v5, %s2451_s16 }
 0x223   :  { %1265 = vrot.lane.b32.xlu0 %v2995_v29, %s2451_s16  ;;  %1173 = vrot.lane.b32.xlu1 %v2981_v24, %s2452_s17 }
 0x227   :  { %1175 = vrot.lane.b32.xlu0 %v2987_v4, %s2452_s17  ;;  %1181 = vrot.lane.b32.xlu1 %v2989_v5, %s2452_s17 }
 0x229   :  { %v3041_v30 = vpop.permute.xlu1 %1607 }
 0x22b   :  { %1183 = vrot.lane.b32.xlu0 %v2995_v29, %s2452_s17  ;;  %1091 = vrot.lane.b32.xlu1 %v2981_v24, %s2453_s18 }
 0x22d   :  { %v3047_v31 = vpop.permute.xlu0 %1609 }
 0x22f   :  { %1093 = vrot.lane.b32.xlu0 %v2987_v4, %s2453_s18  ;;  %1099 = vrot.lane.b32.xlu1 %v2989_v5, %s2453_s18 }
 0x231   :  { %v1616_v32 = vpop.permute.xlu1 %1615 }
 0x233   :  { %1101 = vrot.lane.b32.xlu0 %v2995_v29, %s2453_s18  ;;  %1693 = vrot.lane.b32.xlu1 %v2981_v24, %s2454_s21 }
 0x235   :  { %v1618_v34 = vpop.permute.xlu0 %1617  ;;  %v3058_v35 = vpop.permute.xlu1 %1525 }
 0x237   :  { %1695 = vrot.lane.b32.xlu0 %v2987_v4, %s2454_s21  ;;  %1701 = vrot.lane.b32.xlu1 %v2989_v5, %s2454_s21 }
 0x239   :  { %v3067_v37 = vpop.permute.xlu0 %1527  ;;  %v3069_v38 = vpop.permute.xlu1 %1533 }
 0x23b   :  { %1703 = vrot.lane.b32.xlu0 %v2995_v29, %s2454_s21  ;;  %1813 = vperm.xlu1 %2440, %v1809_v36   ;;  %v2229_v36 = vld [vmem:[%s3399_s1 + $0x6] ss:$8 sm:$0xf] }
 0x23d   :  { %v3073_v39 = vpop.permute.xlu0 %1535  ;;  %v3075_v40 = vpop.permute.xlu1 %1443 }
 0x241   :  { %v3077_v41 = vpop.permute.xlu0 %1445  ;;  %v3079_v42 = vpop.permute.xlu1 %1451 }
 0x245   :  { %v3081_v43 = vpop.permute.xlu0 %1453  ;;  %v3083_v44 = vpop.permute.xlu1 %1333 }
 0x249   :  { %v3085_v45 = vpop.permute.xlu0 %1335  ;;  %v3087_v46 = vpop.permute.xlu1 %1341 }
 0x24d   :  { %v3089_v47 = vpop.permute.xlu0 %1343  ;;  %v3091_v48 = vpop.permute.xlu1 %1251 }
 0x251   :  { %v3093_v49 = vpop.permute.xlu0 %1253  ;;  %v3095_v50 = vpop.permute.xlu1 %1259 }
 0x255   :  { %v3097_v51 = vpop.permute.xlu0 %1261  ;;  %v3099_v52 = vpop.permute.xlu1 %1169 }
 0x259   :  { %v3101_v53 = vpop.permute.xlu0 %1171  ;;  %v3103_v54 = vpop.permute.xlu1 %1177 }
 0x25d   :  { %v3105_v55 = vpop.permute.xlu0 %1179  ;;  %v3107_v56 = vpop.permute.xlu1 %1087 }
 0x261   :  { %v3109_v57 = vpop.permute.xlu0 %1089  ;;  %v3111_v58 = vpop.permute.xlu1 %1095 }
 0x265   :  { %v3113_v59 = vpop.permute.xlu0 %1097  ;;  %v3115_v60 = vpop.permute.xlu1 %1689 }
 0x269   :  { %v3117_v0 = vpop.permute.xlu0 %1691  ;;  %v3119_v2 = vpop.permute.xlu1 %1697 }
 0x26a   :  { %3407 = vst [vmem:[#allocation3_spill] sm:$0xff] %v3117_v0 }
 0x26d   :  { %v3124_v62 = vpop.permute.xlu0 %1699  ;;  %v1612_v63 = vpop.permute.xlu1 %1611 }
 0x26e   :  { %3408 = vst [vmem:[#allocation4_spill] sm:$0xff] %v3124_v62  ;;  %v1625_v16 = vsel %vm315_vm1, %v1612_v63, %v1616_v32  ;;  %v1627_v18 = vsel %vm315_vm1, %v3041_v30, %v1612_v63 }
 0x26f   :  { %v1653_v26 = vmul.f32 %v1636_v11, %v1627_v18  ;;  %v1654_v27 = vmul.f32 %v1640_v15, %v1625_v16  ;;  %v1558_v16 = vrot.slane %v2229_v36, %v2651_v12 }
 0x271   :  { %v1614_v20 = vpop.permute.xlu0 %1613  ;;  %v1620_v21 = vpop.permute.xlu1 %1619 }
 0x272   :  { %v1626_v7 = vsel %vm315_vm1, %v1614_v20, %v1618_v34  ;;  %v1628_v9 = vsel %vm315_vm1, %v3047_v31, %v1614_v20  ;;  %v1623_v63 = vsel %vm315_vm1, %v1616_v32, %v1620_v21  ;;  %v1629_v6 = vsel %vm315_vm1, %v1620_v21, %v3041_v30 }
 0x273   :  { %v1657_v28 = vmul.f32 %v1636_v11, %v1628_v9  ;;  %v1658_v33 = vmul.f32 %v1640_v15, %v1626_v7  ;;  %v1554_v15 = vrot.slane %v2229_v36, %v2658_v13  ;;  %v1655_v32 = vmul.f32 %v1644_v23, %v1623_v63  ;;  %v2224_v63 = vld [vmem:[%s3399_s1 + $0x5] ss:$8 sm:$0xf] }
 0x274   :  { %v1656_v18 = vmul.f32 %v1648_v25, %v1629_v6 }
 0x275   :  { %v2422_v20 = vpack.c.bf16 %v1657_v28, %v1653_v26  ;;  %v1622_v17 = vpop.permute.xlu0 %1621  ;;  %v1530_v0 = vpop.permute.xlu1 %1529  ;;  %v2423_v62 = vpack.c.bf16 %v1658_v33, %v1654_v27 }
 0x276   :  { %v1624_v61 = vsel %vm315_vm1, %v1618_v34, %v1622_v17  ;;  %v1630_v11 = vsel %vm315_vm1, %v1622_v17, %v3047_v31  ;;  %v1543_v30 = vsel %vm271_vm2, %v1530_v0, %v3069_v38  ;;  %v1545_v34 = vsel %vm271_vm2, %v3058_v35, %v1530_v0 }
 0x277   :  { %v1659_v7 = vmul.f32 %v1644_v23, %v1624_v61  ;;  %v1660_v9 = vmul.f32 %v1648_v25, %v1630_v11  ;;  %2012 = vmatprep.subr.bf16.mxu0 %v2423_v62  ;;  %v1562_v23 = vrot.slane %v2229_v36, %v3127_v8  ;;  %v1566_v25 = vrot.slane %v2229_v36, %v3130_v3 }
 0x278   :  { %2013 = vmatpush1.bf16.msra.mxu0 %v2422_v20  ;;  %v1571_v27 = vmul.f32 %v1554_v15, %v1545_v34  ;;  %v1572_v28 = vmul.f32 %v1558_v16, %v1543_v30 }
 0x279   :  { %v2424_v21 = vpack.c.bf16 %v1659_v7, %v1655_v32  ;;  %v1532_v17 = vpop.permute.xlu0 %1531  ;;  %v1538_v31 = vpop.permute.xlu1 %1537  ;;  %v2425_v26 = vpack.c.bf16 %v1660_v9, %v1656_v18  ;;  %v1472_v7 = vrot.slane %v2224_v63, %v2658_v13 }
 0x27a   :  { %v1544_v6 = vsel %vm271_vm2, %v1532_v17, %v3073_v39  ;;  %v1546_v62 = vsel %vm271_vm2, %v3067_v37, %v1532_v17  ;;  %v1541_v20 = vsel %vm271_vm2, %v3069_v38, %v1538_v31  ;;  %v1547_v61 = vsel %vm271_vm2, %v1538_v31, %v3058_v35 }
 0x27b   :  { %v1575_v0 = vmul.f32 %v1554_v15, %v1546_v62  ;;  %v1576_v33 = vmul.f32 %v1558_v16, %v1544_v6  ;;  %2053 = vmatprep.subr.bf16.mxu1 %v2425_v26  ;;  %v1476_v38 = vrot.slane %v2224_v63, %v2651_v12  ;;  %v1573_v9 = vmul.f32 %v1562_v23, %v1541_v20  ;;  %v2215_v20 = vld [vmem:[%s3399_s1 + $0x3] ss:$8 sm:$0xf] }
 0x27c   :  { %2054 = vmatpush1.bf16.msra.mxu1 %v2424_v21  ;;  %v1574_v30 = vmul.f32 %v1566_v25, %v1547_v61 }
 0x27d   :  { %v2418_v11 = vpack.c.bf16 %v1575_v0, %v1571_v27  ;;  %v1540_v36 = vpop.permute.xlu0 %1539  ;;  %v1448_v32 = vpop.permute.xlu1 %1447  ;;  %v2419_v18 = vpack.c.bf16 %v1576_v33, %v1572_v28 }
 0x27e   :  { %v1542_v15 = vsel %vm271_vm2, %v3073_v39, %v1540_v36  ;;  %v1548_v16 = vsel %vm271_vm2, %v1540_v36, %v3067_v37  ;;  %v1461_v21 = vsel %vm227_vm3, %v1448_v32, %v3079_v42  ;;  %v1463_v39 = vsel %vm227_vm3, %v3075_v40, %v1448_v32 }
 0x27f   :  { %v1577_v35 = vmul.f32 %v1562_v23, %v1542_v15  ;;  %v1578_v34 = vmul.f32 %v1566_v25, %v1548_v16  ;;  %2014 = vmatprep.subr.bf16.mxu0 %v2419_v18  ;;  %v1480_v23 = vrot.slane %v2224_v63, %v3127_v8  ;;  %v1484_v25 = vrot.slane %v2224_v63, %v3130_v3 }
 0x280   :  { %2015 = vmatpush1.bf16.msra.mxu0 %v2418_v11  ;;  %v1489_v27 = vmul.f32 %v1472_v7, %v1463_v39  ;;  %v1490_v28 = vmul.f32 %v1476_v38, %v1461_v21  ;;  %v2411_v15 = vpack.c.bf16 %v2987_v4, %v2981_v24  ;;  %v2413_v39 = vpack.c.bf16 %v2995_v29, %v2989_v5  ;;  %v2210_v5 = vld [vmem:[%s3399_s1 + $0x2] ss:$8 sm:$0xf] }
 0x281   :  { %v2420_v17 = vpack.c.bf16 %v1577_v35, %v1573_v9  ;;  %v1450_v37 = vpop.permute.xlu0 %1449  ;;  %v1456_v31 = vpop.permute.xlu1 %1455  ;;  %v2421_v26 = vpack.c.bf16 %v1578_v34, %v1574_v30 }
 0x282   :  { %v1462_v6 = vsel %vm227_vm3, %v1450_v37, %v3081_v43  ;;  %v1464_v62 = vsel %vm227_vm3, %v3077_v41, %v1450_v37  ;;  %v1459_v61 = vsel %vm227_vm3, %v3079_v42, %v1456_v31  ;;  %v1465_v11 = vsel %vm227_vm3, %v1456_v31, %v3075_v40 }
 0x283   :  { %v1493_v0 = vmul.f32 %v1472_v7, %v1464_v62  ;;  %v1494_v33 = vmul.f32 %v1476_v38, %v1462_v6  ;;  %2055 = vmatprep.subr.bf16.mxu1 %v2421_v26  ;;  %v1366_v7 = vrot.slane %v2215_v20, %v2651_v12  ;;  %v1370_v40 = vrot.slane %v2215_v20, %v3127_v8 }
 0x284   :  { %2056 = vmatpush1.bf16.msra.mxu1 %v2420_v17  ;;  %v1491_v38 = vmul.f32 %v1480_v23, %v1459_v61  ;;  %v1492_v9 = vmul.f32 %v1484_v25, %v1465_v11  ;;  %v1362_v31 = vrot.slane %v2215_v20, %v2658_v13  ;;  %v1374_v26 = vrot.slane %v2215_v20, %v3130_v3 }
 0x285   :  { %v2414_v36 = vpack.c.bf16 %v1493_v0, %v1489_v27  ;;  %v1458_v63 = vpop.permute.xlu0 %1457  ;;  %v1338_v32 = vpop.permute.xlu1 %1337  ;;  %v2415_v18 = vpack.c.bf16 %v1494_v33, %v1490_v28  ;;  %v3409_v28 = vpack.c.bf16 %v2911_v14, %v2907_v1 }
 0x286   :  { %v1460_v16 = vsel %vm227_vm3, %v3081_v43, %v1458_v63  ;;  %v1466_v42 = vsel %vm227_vm3, %v1458_v63, %v3077_v41  ;;  %v1351_v24 = vsel %vm169_vm4, %v1338_v32, %v3087_v46  ;;  %v1353_v4 = vsel %vm169_vm4, %v3083_v44, %v1338_v32 }
 0x287   :  { %v1495_v30 = vmul.f32 %v1480_v23, %v1460_v16  ;;  %v1496_v35 = vmul.f32 %v1484_v25, %v1466_v42  ;;  %2016 = vmatprep.subr.bf16.mxu0 %v2415_v18  ;;  %v1380_v6 = vmul.f32 %v1366_v7, %v1353_v4  ;;  %v1381_v62 = vmul.f32 %v1370_v40, %v1351_v24  ;;  %v2205_v4 = vld [vmem:[%s3399_s1 + $0x1] ss:$8 sm:$0xf] }
 0x288   :  { %2017 = vmatpush1.bf16.msra.mxu0 %v2414_v36  ;;  %v1288_v36 = vrot.slane %v2210_v5, %v3127_v8 }
 0x289   :  { %v2416_v43 = vpack.c.bf16 %v1495_v30, %v1491_v38  ;;  %v1340_v41 = vpop.permute.xlu0 %1339  ;;  %2018 = vmatprep.subr.bf16.mxu0 %v2411_v15  ;;  %v1346_v34 = vpop.permute.xlu1 %1345  ;;  %v2417_v21 = vpack.c.bf16 %v1496_v35, %v1492_v9  ;;  %v1280_v9 = vrot.slane %v2210_v5, %v2658_v13  ;;  %v1292_v30 = vrot.slane %v2210_v5, %v3130_v3 }
 0x28a   :  { %v1352_v17 = vsel %vm169_vm4, %v1340_v41, %v3089_v47  ;;  %v1354_v37 = vsel %vm169_vm4, %v3085_v45, %v1340_v41  ;;  %v1349_v29 = vsel %vm169_vm4, %v3087_v46, %v1346_v34  ;;  %v1355_v27 = vsel %vm169_vm4, %v1346_v34, %v3083_v44 }
 0x28b   :  { %v1384_v23 = vmul.f32 %v1366_v7, %v1354_v37  ;;  %v1385_v25 = vmul.f32 %v1370_v40, %v1352_v17  ;;  %2057 = vmatprep.subr.bf16.mxu1 %v2417_v21  ;;  %v1284_v44 = vrot.slane %v2210_v5, %v2651_v12  ;;  %v1379_v1 = vmul.f32 %v1362_v31, %v1355_v27 }
 0x28c   :  { %2019 = vmatpush1.bf16.msra.mxu0 %v3409_v28  ;;  %2058 = vmatpush1.bf16.msra.mxu1 %v2416_v43  ;;  %v1382_v14 = vmul.f32 %v1374_v26, %v1349_v29 }
 0x28d   :  { %v2408_v0 = vpack.c.bf16 %v1385_v25, %v1381_v62  ;;  %v1348_v33 = vpop.permute.xlu0 %1347  ;;  %2059 = vmatprep.subr.bf16.mxu1 %v2413_v39  ;;  %v1256_v20 = vpop.permute.xlu1 %1255  ;;  %v2407_v61 = vpack.c.bf16 %v1384_v23, %v1380_v6 }
 0x28e   :  { %v1350_v11 = vsel %vm169_vm4, %v3089_v47, %v1348_v33  ;;  %v1356_v46 = vsel %vm169_vm4, %v1348_v33, %v3085_v45  ;;  %v1269_v18 = vsel %vm125_vm5, %v1256_v20, %v3095_v50  ;;  %v1271_v47 = vsel %vm125_vm5, %v3091_v48, %v1256_v20 }
 0x28f   :  { %v1383_v63 = vmul.f32 %v1362_v31, %v1356_v46  ;;  %v1386_v32 = vmul.f32 %v1374_v26, %v1350_v11  ;;  %2020 = vmatprep.subr.bf16.mxu0 %v2407_v61  ;;  %v3410_v45 = vpack.c.bf16 %v2921_v22, %v2917_v19  ;;  %v1298_v35 = vmul.f32 %v1284_v44, %v1271_v47 }
 0x290   :  { %v1299_v24 = vmul.f32 %v1288_v36, %v1269_v18  ;;  %v1206_v26 = vrot.slane %v2205_v4, %v3127_v8  ;;  %v1198_v33 = vrot.slane %v2205_v4, %v2658_v13  ;;  %v1210_v20 = vrot.slane %v2205_v4, %v3130_v3 }
 0x291   :  { %2060 = vmatpush1.bf16.msra.mxu1 %v3410_v45  ;;  %v2406_v15 = vpack.c.bf16 %v1383_v63, %v1379_v1  ;;  %v1258_v16 = vpop.permute.xlu0 %1257  ;;  %v1264_v42 = vpop.permute.xlu1 %1263  ;;  %v2409_v7 = vpack.c.bf16 %v1386_v32, %v1382_v14 }
 0x292   :  { %v1270_v40 = vsel %vm125_vm5, %v1258_v16, %v3097_v51  ;;  %v1272_v38 = vsel %vm125_vm5, %v3093_v49, %v1258_v16  ;;  %v1267_v43 = vsel %vm125_vm5, %v3095_v50, %v1264_v42  ;;  %v1273_v41 = vsel %vm125_vm5, %v1264_v42, %v3091_v48 }
 0x293   :  { %v1302_v19 = vmul.f32 %v1284_v44, %v1272_v38  ;;  %v1303_v22 = vmul.f32 %v1288_v36, %v1270_v40  ;;  %2021 = vmatpush1.bf16.msra.mxu0 %v2406_v15  ;;  %2061 = vmatprep.subr.bf16.mxu1 %v2409_v7  ;;  %v1202_v50 = vrot.slane %v2205_v4, %v2651_v12  ;;  %v1111_v36 = vld [vmem:[%s3399_s1] ss:$8 sm:$0xf] }
 0x294   :  { %v1297_v6 = vmul.f32 %v1280_v9, %v1273_v41  ;;  %v1300_v48 = vmul.f32 %v1292_v30, %v1267_v43  ;;  %v1124_v16 = vrot.slane %v1111_v36, %v3127_v8  ;;  %v1128_v4 = vrot.slane %v1111_v36, %v3130_v3 }
 0x295   :  { %v2404_v34 = vpack.c.bf16 %v1303_v22, %v1299_v24  ;;  %2062 = vmatpush1.bf16.msra.mxu1 %v2408_v0  ;;  %v1266_v21 = vpop.permute.xlu0 %1265  ;;  %v1174_v39 = vpop.permute.xlu1 %1173  ;;  %v2403_v17 = vpack.c.bf16 %v1302_v19, %v1298_v35  ;;  %v1116_v22 = vrot.slane %v1111_v36, %v2658_v13 }
 0x296   :  { %v1268_v37 = vsel %vm125_vm5, %v3097_v51, %v1266_v21  ;;  %v1274_v31 = vsel %vm125_vm5, %v1266_v21, %v3093_v49  ;;  %v1187_v25 = vsel %vm81_vm6, %v1174_v39, %v3103_v54  ;;  %v1189_v51 = vsel %vm81_vm6, %v3099_v52, %v1174_v39  ;;  %v2239_v39 = vld [vmem:[%s3399_s1 + $0x20] ss:$8 sm:$0xf] }
 0x297   :  { %v1301_v62 = vmul.f32 %v1280_v9, %v1274_v31  ;;  %v1304_v23 = vmul.f32 %v1292_v30, %v1268_v37  ;;  %2022 = vmatprep.subr.bf16.mxu0 %v2403_v17  ;;  %v1216_v61 = vmul.f32 %v1202_v50, %v1189_v51  ;;  %v1217_v11 = vmul.f32 %v1206_v26, %v1187_v25 }
 0x299   :  { %v2402_v5 = vpack.c.bf16 %v1301_v62, %v1297_v6  ;;  %v1176_v29 = vpop.permute.xlu0 %1175  ;;  %v1182_v49 = vpop.permute.xlu1 %1181  ;;  %v2405_v27 = vpack.c.bf16 %v1304_v23, %v1300_v48  ;;  %v1722_v23 = vrot.slane %v2239_v39, %v2651_v12 }
 0x29a   :  { %v1188_v28 = vsel %vm81_vm6, %v1176_v29, %v3105_v55  ;;  %v1190_v0 = vsel %vm81_vm6, %v3101_v53, %v1176_v29  ;;  %v1185_v1 = vsel %vm81_vm6, %v3103_v54, %v1182_v49  ;;  %v1191_v14 = vsel %vm81_vm6, %v1182_v49, %v3099_v52 }
 0x29b   :  { %v1220_v46 = vmul.f32 %v1202_v50, %v1190_v0  ;;  %v1221_v44 = vmul.f32 %v1206_v26, %v1188_v28  ;;  %2023 = vmatpush1.bf16.msra.mxu0 %v2402_v5  ;;  %2063 = vmatprep.subr.bf16.mxu1 %v2405_v27  ;;  %v1120_v54 = vrot.slane %v1111_v36, %v2651_v12  ;;  %v3412_v0 = vld [vmem:[#allocation3_spill] sm:$0xff] }
 0x29c   :  { %2064 = vmatpush1.bf16.msra.mxu1 %v2404_v34  ;;  %v1215_v42 = vmul.f32 %v1198_v33, %v1191_v14  ;;  %v1218_v52 = vmul.f32 %v1210_v20, %v1185_v1 }
 0x29d   :  { %v2400_v63 = vpack.c.bf16 %v1221_v44, %v1217_v11  ;;  %v1184_v32 = vpop.permute.xlu0 %1183  ;;  %v1092_v18 = vpop.permute.xlu1 %1091  ;;  %v2399_v47 = vpack.c.bf16 %v1220_v46, %v1216_v61  ;;  %v1730_v61 = vrot.slane %v2239_v39, %v3130_v3 }
 0x29e   :  { %v1186_v45 = vsel %vm81_vm6, %v3105_v55, %v1184_v32  ;;  %v1192_v15 = vsel %vm81_vm6, %v1184_v32, %v3101_v53  ;;  %v1105_v38 = vsel %vm38_vm7, %v1092_v18, %v3111_v58  ;;  %v1107_v55 = vsel %vm38_vm7, %v3107_v56, %v1092_v18 }
 0x29f   :  { %v1219_v7 = vmul.f32 %v1198_v33, %v1192_v15  ;;  %v1222_v40 = vmul.f32 %v1210_v20, %v1186_v45  ;;  %2024 = vmatprep.subr.bf16.mxu0 %v2399_v47  ;;  %v1134_v43 = vmul.f32 %v1120_v54, %v1107_v55  ;;  %v1135_v41 = vmul.f32 %v1124_v16, %v1105_v38 }
 0x2a0   :  { %v1726_v20 = vrot.slane %v2239_v39, %v3127_v8 }
 0x2a1   :  { %v2398_v9 = vpack.c.bf16 %v1219_v7, %v1215_v42  ;;  %v1094_v30 = vpop.permute.xlu0 %1093  ;;  %v1100_v53 = vpop.permute.xlu1 %1099  ;;  %v2401_v35 = vpack.c.bf16 %v1222_v40, %v1218_v52 }
 0x2a2   :  { %v1106_v24 = vsel %vm38_vm7, %v1094_v30, %v3113_v59  ;;  %v1108_v19 = vsel %vm38_vm7, %v3109_v57, %v1094_v30  ;;  %v1103_v17 = vsel %vm38_vm7, %v3111_v58, %v1100_v53  ;;  %v1109_v37 = vsel %vm38_vm7, %v1100_v53, %v3107_v56 }
 0x2a3   :  { %v1138_v34 = vmul.f32 %v1120_v54, %v1108_v19  ;;  %v1139_v21 = vmul.f32 %v1124_v16, %v1106_v24  ;;  %2025 = vmatpush1.bf16.msra.mxu0 %v2398_v9  ;;  %2065 = vmatprep.subr.bf16.mxu1 %v2401_v35  ;;  %v1718_v58 = vrot.slane %v2239_v39, %v2658_v13  ;;  %v3411_v13 = vld [vmem:[#allocation4_spill] sm:$0xff] }
 0x2a4   :  { %2066 = vmatpush1.bf16.msra.mxu1 %v2400_v63  ;;  %v1133_v25 = vmul.f32 %v1116_v22, %v1109_v37  ;;  %v1136_v56 = vmul.f32 %v1128_v4, %v1103_v17 }
 0x2a5   :  { %v2396_v31 = vpack.c.bf16 %v1139_v21, %v1135_v41  ;;  %v1102_v50 = vpop.permute.xlu0 %1101  ;;  %v1694_v26 = vpop.permute.xlu1 %1693  ;;  %v2395_v6 = vpack.c.bf16 %v1138_v34, %v1134_v43 }
 0x2a6   :  { %v1104_v48 = vsel %vm38_vm7, %v3113_v59, %v1102_v50  ;;  %v1110_v62 = vsel %vm38_vm7, %v1102_v50, %v3109_v57  ;;  %v1707_v29 = vsel %vm359_vm8, %v1694_v26, %v3119_v2  ;;  %v1709_v59 = vsel %vm359_vm8, %v3115_v60, %v1694_v26 }
 0x2a7   :  { %v1137_v51 = vmul.f32 %v1116_v22, %v1110_v62  ;;  %v1140_v5 = vmul.f32 %v1128_v4, %v1104_v48  ;;  %2026 = vmatprep.subr.bf16.mxu0 %v2395_v6  ;;  %v1735_v11 = vmul.f32 %v1718_v58, %v1709_v59  ;;  %v1736_v46 = vmul.f32 %v1722_v23, %v1707_v29 }
 0x2a9   :  { %v2394_v49 = vpack.c.bf16 %v1137_v51, %v1133_v25  ;;  %v1696_v27 = vpop.permute.xlu0 %1695  ;;  %v1702_v57 = vpop.permute.xlu1 %1701  ;;  %v2397_v28 = vpack.c.bf16 %v1140_v5, %v1136_v56 }
 0x2aa   :  { %v1708_v12 = vsel %vm359_vm8, %v1696_v27, %v3411_v13  ;;  %v1710_v33 = vsel %vm359_vm8, %v3412_v0, %v1696_v27  ;;  %v1705_v1 = vsel %vm359_vm8, %v3119_v2, %v1702_v57  ;;  %v1711_v14 = vsel %vm359_vm8, %v1702_v57, %v3115_v60  ;;  %v2446_v60 = vld [vmem:[%s3402_s4] ss:$8 sps:$4 sm:$0xff]  }
 0x2ab   :  { %v1739_v44 = vmul.f32 %v1718_v58, %v1710_v33  ;;  %v1740_v36 = vmul.f32 %v1722_v23, %v1708_v12  ;;  %2027 = vmatpush1.bf16.msra.mxu0 %v2394_v49  ;;  %2067 = vmatprep.subr.bf16.mxu1 %v2397_v28  ;;  %v1737_v47 = vmul.f32 %v1726_v20, %v1705_v1 }
 0x2ac   :  { %2068 = vmatpush1.bf16.msra.mxu1 %v2396_v31  ;;  %v1738_v45 = vmul.f32 %v1730_v61, %v1711_v14 }
 0x2ad   :  { %v2426_v63 = vpack.c.bf16 %v1739_v44, %v1735_v11  ;;  %v1704_v32 = vpop.permute.xlu0 %1703  ;;  %v2427_v8 = vpack.c.bf16 %v1740_v36, %v1736_v46 }
 0x2ae   :  { %v1706_v3 = vsel %vm359_vm8, %v3411_v13, %v1704_v32  ;;  %v1712_v18 = vsel %vm359_vm8, %v1704_v32, %v3412_v0 }
 0x2af   :  { %v1741_v2 = vmul.f32 %v1726_v20, %v1706_v3  ;;  %v1742_v15 = vmul.f32 %v1730_v61, %v1712_v18  ;;  %2042 = vmatprep.subr.bf16.mxu0 %v2427_v8 }
 0x2b0   :  { %2043 = vmatpush2.bf16.msra.mxu0 %v2426_v63 }
 0x2b1   :  { %v2428_v54 = vpack.c.bf16 %v1741_v2, %v1737_v47  ;;  %v2429_v16 = vpack.c.bf16 %v1742_v15, %v1738_v45 }
 0x2b3   :  { %2045 = vmatmul.mubr.bf16.vlgmr.msra.gmra.mxu0 %v2446_v60  ;;  %2083 = vmatprep.subr.bf16.mxu1 %v2429_v16 }
 0x2b4   :  { %2084 = vmatpush2.bf16.msra.mxu1 %v2428_v54 }
 0x2b6   :  { %v1814_v42 = vpop.permute.xlu1 %1813 }
 0x2b7   :  { %2086 = vmatmul.mubr.bf16.vlgmr.msra.gmra.mxu1 %v2446_v60 }
 0x373   :  { %v2046_v52 = vpop.f32.mrf.mxu0 }
 0x374   :  { %v2047_v10 = vadd.f32 %v2046_v52, %v1814_v42 }
 0x375   :  { %v2048_v7 = vpop.f32.mrf.mxu0 }
 0x376   :  { %v2094_v40 = vmax.f32 %v2047_v10, 0.0  ;;  %v2049_v38 = vadd.f32 %v2048_v7, %v1814_v42 }
 0x377   :  { %v2050_v55 = vpop.f32.mrf.mxu0  ;;  %v2087_v9 = vpop.f32.mrf.mxu1 }
 0x378   :  { %2098 = vst [vmem:[%s3404_s6] sm:$0xff] %v2094_v40  ;;  %v2095_v30 = vmax.f32 %v2049_v38, 0.0  ;;  %v2088_v53 = vadd.f32 %v2087_v9, %v1814_v42 }
 0x379   :  { %v2051_v35 = vpop.f32.mrf.mxu0  ;;  %v2089_v24 = vpop.f32.mrf.mxu1 }
 0x37a   :  { %2099 = vst [vmem:[%s3404_s6 + $0x8] sm:$0xff] %v2095_v30  ;;  %v2096_v19 = vmax.f32 %v2088_v53, 0.0  ;;  %v2090_v22 = vadd.f32 %v2089_v24, %v1814_v42 }
 0x37b   :  { %v2091_v4 = vpop.f32.mrf.mxu1 }
 0x37c   :  { %2284 = vst [vmem:[%s3404_s6 + $0x10] sm:$0xff] %v2096_v19  ;;  %v2097_v43 = vmax.f32 %v2090_v22, 0.0 }
 0x37d   :  { %v2092_v41 = vpop.f32.mrf.mxu1 }
 0x37e   :  { %2285 = vst [vmem:[%s3404_s6 + $0x18] sm:$0xff] %v2097_v43 }

</bundles_post_ra>
